<compile_context>
chip_gen: v5e
topology: v5e:2x2
jax: 0.10.0
libtpu: 0.0.40
codegen_flags: <defaults>
</compile_context>

<pallas_src>
import functools
import math

import jax
import jax.numpy as jnp
from jax.experimental import pallas as pl
from jax.experimental.pallas import tpu as pltpu


# ----------------------------------------------------------------------------
# Fused encoder-stack kernel: grid = (batch_chunks, n_layers)
# ----------------------------------------------------------------------------
def _encoder_stack_kernel(n_heads, b_chunk, seq_len,
                          x_ref, mask_ref,
                          wq_ref, bq_ref, wk_ref, bk_ref, wv_ref, bv_ref,
                          wo_ref, bo_ref, w1_ref, b1_ref, w2_ref, b2_ref,
                          resw_ref, out_ref, x_scr):
    layer = pl.program_id(1)
    n_layers = pl.num_programs(1)

    # Load this chunk's activation into the resident VMEM accumulator.
    @pl.when(layer == 0)
    def _():
        x_scr[...] = x_ref[...]

    M, H = x_scr.shape
    hd = H // n_heads
    inv_sqrt_hd = 1.0 / math.sqrt(hd)
    resw = resw_ref[layer]                       # scalar ReZero weight (SMEM)

    x = x_scr[...]                               # (M, H) f32, M = b_chunk * S
    xb = x.astype(jnp.bfloat16)
    mask = mask_ref[...]                         # (S, S) additive float mask

    # --- Q/K/V projections (head-major weights, batch folded into M) --------
    q_parts, k_parts, v_parts = [], [], []
    for h in range(n_heads):                     # static unroll; full-M matmuls
        qh = jnp.dot(xb, wq_ref[h], preferred_element_type=jnp.float32) + bq_ref[h]
        kh = jnp.dot(xb, wk_ref[h], preferred_element_type=jnp.float32) + bk_ref[h]
        vh = jnp.dot(xb, wv_ref[h], preferred_element_type=jnp.float32) + bv_ref[h]
        for b in range(b_chunk):                 # sublane-aligned row slices
            rows = slice(b * seq_len, (b + 1) * seq_len)
            q_parts.append(qh[rows])
            k_parts.append(kh[rows])
            v_parts.append(vh[rows])
    # (G, S, hd) with g = h * b_chunk + b  (leading-axis stack only; no lane
    # relayouts / transposes).
    qg = jnp.stack(q_parts).astype(jnp.bfloat16)
    kg = jnp.stack(k_parts).astype(jnp.bfloat16)
    vg = jnp.stack(v_parts).astype(jnp.bfloat16)

    # --- batched attention core ---------------------------------------------
    s = jnp.einsum('gqd,gkd->gqk', qg, kg, preferred_element_type=jnp.float32)
    s = s * inv_sqrt_hd + mask[None]
    s = s - jnp.max(s, axis=-1, keepdims=True)
    p = jnp.exp(s)
    p = p * pl.reciprocal(jnp.sum(p, axis=-1, keepdims=True), approx=True)
    o = jnp.einsum('gqk,gkd->gqd', p.astype(jnp.bfloat16), vg,
                   preferred_element_type=jnp.float32)           # (G, S, hd)

    # --- output projection: concat_h(o_h) @ Wo == sum_h o_h @ Wo[h] ----------
    row_blocks = []
    for b in range(b_chunk):
        acc = None
        for h in range(n_heads):
            g = h * b_chunk + b
            t = jnp.dot(o[g].astype(jnp.bfloat16), wo_ref[h],
                        preferred_element_type=jnp.float32)       # (S, H)
            acc = t if acc is None else acc + t
        row_blocks.append(acc)
    if b_chunk == 1:
        attn = row_blocks[0] + bo_ref[...]
    else:
        attn = jnp.concatenate(row_blocks, axis=0) + bo_ref[...]  # (M, H)

    # --- ReZero residual #1 (dropout1 = identity in eval) --------------------
    src = x + resw * attn

    # --- position-wise feed-forward (single full-M matmuls) ------------------
    h1 = jnp.dot(src.astype(jnp.bfloat16), w1_ref[...],
                 preferred_element_type=jnp.float32) + b1_ref[...]
    h1 = jnp.maximum(h1, 0.0)
    ffn = jnp.dot(h1.astype(jnp.bfloat16), w2_ref[...],
                  preferred_element_type=jnp.float32) + b2_ref[...]

    # --- ReZero residual #2 (dropout2 = identity in eval) --------------------
    new_x = src + resw * ffn
    x_scr[...] = new_x                           # stays resident for next layer

    @pl.when(layer == n_layers - 1)
    def _():
        out_ref[...] = new_x


def encoder_stack_pallas(x, mask, sp, n_heads, batch_chunks=1):
    """Run all encoder layers in one fused pallas_call."""
    B, S, H = x.shape
    L, nH, _, hd = sp["wq"].shape
    PF = sp["w1"].shape[-1]
    assert nH == n_heads and nH * hd == H
    assert B % batch_chunks == 0
    Bc = B // batch_chunks
    M = Bc * S

    x2 = x.reshape(B * S, H).astype(jnp.float32)
    mask = mask.astype(jnp.float32)

    def wspec(shape):
        nd = len(shape)
        return pl.BlockSpec((None,) + tuple(shape),
                            lambda c, l, _n=nd: (l,) + (0,) * _n)

    in_specs = [
        pl.BlockSpec((M, H), lambda c, l: (c, 0)),       # x rows, blocked by chunk
        pl.BlockSpec((S, S), lambda c, l: (0, 0)),       # mask (VMEM resident)
        wspec((nH, H, hd)), wspec((nH, 1, hd)),          # wq, bq
        wspec((nH, H, hd)), wspec((nH, 1, hd)),          # wk, bk
        wspec((nH, H, hd)), wspec((nH, 1, hd)),          # wv, bv
        wspec((nH, hd, H)), wspec((1, H)),               # wo, bo
        wspec((H, PF)),     wspec((1, PF)),              # w1, b1
        wspec((PF, H)),     wspec((1, H)),               # w2, b2
        pl.BlockSpec(memory_space=pltpu.MemorySpace.SMEM),  # resweight (L,)
    ]
    out_spec = pl.BlockSpec((M, H), lambda c, l: (c, 0))

    kernel = functools.partial(_encoder_stack_kernel, n_heads, Bc, S)
    out = pl.pallas_call(
        kernel,
        out_shape=jax.ShapeDtypeStruct((B * S, H), jnp.float32),
        grid_spec=pltpu.PrefetchScalarGridSpec(
            num_scalar_prefetch=0,
            grid=(batch_chunks, L),                      # layers innermost
            in_specs=in_specs,
            out_specs=out_spec,
            scratch_shapes=[pltpu.VMEM((M, H), jnp.float32)],
        ),
        compiler_params=pltpu.CompilerParams(
            dimension_semantics=("parallel", "arbitrary"),
            vmem_limit_bytes=48 * 1024 * 1024,
        ),
    )(x2, mask,
      sp["wq"], sp["bq"], sp["wk"], sp["bk"], sp["wv"], sp["bv"],
      sp["wo"], sp["bo"], sp["w1"], sp["b1"], sp["w2"], sp["b2"],
      sp["resweight"])
    return out.reshape(B, S, H)


# ----------------------------------------------------------------------------
# Wrapper-side parameter packing (layer stacking + head-major weights, bf16)
# ----------------------------------------------------------------------------
def _stack_layer_params(layers, n_heads):
    L = len(layers)
    H = layers[0]["wq"].shape[0]
    PF = layers[0]["w1"].shape[1]
    hd = H // n_heads
    bf = jnp.bfloat16

    def stk(name):
        return jnp.stack([lp[name] for lp in layers])

    return {
        # head-major projection weights: (L, nH, H, hd)
        "wq": stk("wq").reshape(L, H, n_heads, hd).transpose(0, 2, 1, 3).astype(bf),
        "wk": stk("wk").reshape(L, H, n_heads, hd).transpose(0, 2, 1, 3).astype(bf),
        "wv": stk("wv").reshape(L, H, n_heads, hd).transpose(0, 2, 1, 3).astype(bf),
        "bq": stk("bq").reshape(L, n_heads, 1, hd),
        "bk": stk("bk").reshape(L, n_heads, 1, hd),
        "bv": stk("bv").reshape(L, n_heads, 1, hd),
        # output projection split by head rows: (L, nH, hd, H)
        "wo": stk("wo").reshape(L, n_heads, hd, H).astype(bf),
        "bo": stk("bo").reshape(L, 1, H),
        "w1": stk("w1").astype(bf),
        "b1": stk("b1").reshape(L, 1, PF),
        "w2": stk("w2").astype(bf),
        "b2": stk("b2").reshape(L, 1, H),
        "resweight": stk("resweight").reshape(L).astype(jnp.float32),
    }


# ----------------------------------------------------------------------------
# Encoder forward (embedding gather stays in plain JAX, stack in Pallas)
# ----------------------------------------------------------------------------
def encoder_forward(src_tokens, src_mask, params, n_heads, batch_chunks=1):
    tok_emb = params["tok_embedding"]   # (vocab, H)
    pos_emb = params["pos_embedding"]   # (max_length, H)
    B, S = src_tokens.shape
    H = tok_emb.shape[1]
    scale = jnp.sqrt(jnp.float32(H))
    x = tok_emb[src_tokens] * scale + pos_emb[jnp.arange(S)][None, :, :]
    # Encoder-level dropout (and all in-layer dropouts) = identity in eval mode.
    stacked = _stack_layer_params(params["layers"], n_heads)
    return encoder_stack_pallas(x, src_mask, stacked, n_heads,
                                batch_chunks=batch_chunks)


# ----------------------------------------------------------------------------
# Deterministic parameter init (shapes from the module's __init__)
# ----------------------------------------------------------------------------
def init_params(key, vocab, hid, n_layers, pf, max_length):
    keys = jax.random.split(key, 2 + n_layers)
    params = {
        "tok_embedding": 0.1 * jax.random.normal(keys[0], (vocab, hid), jnp.float32),
        "pos_embedding": 0.1 * jax.random.normal(keys[1], (max_length, hid), jnp.float32),
        "layers": [],
    }
    for i in range(n_layers):
        lk = jax.random.split(keys[2 + i], 7)

        def mk(k, shape, s=0.1):
            return s * jax.random.normal(k, shape, jnp.float32)

        lp = {
            "wq": mk(lk[0], (hid, hid)), "bq": jnp.zeros((hid,), jnp.float32),
            "wk": mk(lk[1], (hid, hid)), "bk": jnp.zeros((hid,), jnp.float32),
            "wv": mk(lk[2], (hid, hid)), "bv": jnp.zeros((hid,), jnp.float32),
            "wo": mk(lk[3], (hid, hid)), "bo": jnp.zeros((hid,), jnp.float32),
            "w1": mk(lk[4], (hid, pf)),  "b1": mk(lk[5], (pf,), 0.01),
            "w2": mk(lk[6], (pf, hid)),  "b2": jnp.zeros((hid,), jnp.float32),
            # ReZero init is 0 (would make layers identity); use 0.1 so the
            # attention/FFN path actually contributes (resweight is trainable).
            "resweight": jnp.array(0.1, jnp.float32),
        }
        params["layers"].append(lp)
    return params


# ----------------------------------------------------------------------------
# Pure-JAX f32 reference (for correctness check)
# ----------------------------------------------------------------------------
def _reference_layer(x, mask, p, n_heads):
    B, S, H = x.shape
    hd = H // n_heads
    q = x @ p["wq"] + p["bq"]
    k = x @ p["wk"] + p["bk"]
    v = x @ p["wv"] + p["bv"]

    def split(t):
        return t.reshape(B, S, n_heads, hd).transpose(0, 2, 1, 3)

    q, k, v = split(q), split(k), split(v)
    s = jnp.einsum("bhqd,bhkd->bhqk", q, k) / jnp.sqrt(jnp.float32(hd)) + mask
    pa = jax.nn.softmax(s, axis=-1)
    o = jnp.einsum("bhqk,bhkd->bhqd", pa, v).transpose(0, 2, 1, 3).reshape(B, S, H)
    attn = o @ p["wo"] + p["bo"]
    resw = p["resweight"]
    src = x + resw * attn
    ffn = jnp.maximum(src @ p["w1"] + p["b1"], 0.0) @ p["w2"] + p["b2"]
    return src + resw * ffn


def _reference_encoder(src_tokens, src_mask, params, n_heads):
    tok_emb = params["tok_embedding"]
    pos_emb = params["pos_embedding"]
    B, S = src_tokens.shape
    H = tok_emb.shape[1]
    x = tok_emb[src_tokens] * jnp.sqrt(jnp.float32(H)) + pos_emb[jnp.arange(S)][None]
    for lp in params["layers"]:
        x = _reference_layer(x, src_mask, lp, n_heads)
    return x


# ----------------------------------------------------------------------------
if __name__ == "__main__":
    VOCAB, HID, N_LAYERS, N_HEADS, PF, MAXLEN = 50, 32, 2, 4, 64, 100
    B, S = 2, 8

    key = jax.random.PRNGKey(0)
    kp, kt = jax.random.split(key)
    params = init_params(kp, VOCAB, HID, N_LAYERS, PF, MAXLEN)

    src_tokens = jax.random.randint(kt, (B, S), 0, VOCAB, dtype=jnp.int32)
    # Additive float attention mask (causal), same convention as PyTorch
    # MultiheadAttention float attn_mask (added to scores before softmax).
    causal = jnp.tril(jnp.ones((S, S), dtype=bool))
    src_mask = jnp.where(causal, 0.0, -1e9).astype(jnp.float32)

    # batch_chunks=2 gives a size-2 "parallel" grid axis (both v7x TCs get work).
    out = encoder_forward(src_tokens, src_mask, params, N_HEADS, batch_chunks=2)
    out = jax.block_until_ready(out)

    ref = jax.block_until_ready(_reference_encoder(src_tokens, src_mask, params, N_HEADS))
    assert out.shape == (B, S, HID)
    # bf16 matmuls + approx reciprocal introduce small drift vs the f32 reference.
    assert jnp.allclose(out, ref, rtol=2e-2, atol=2e-2), "mismatch vs JAX reference"

    print("KERNEL_OK")
</pallas_src>

<mosaic_0001>
module attributes {stable_mosaic.version = 11 : i64} {
  func.func @_encoder_stack_kernel(%arg0: i32, %arg1: i32, %arg2: memref<8x32xf32, #tpu.memory_space<vmem>>, %arg3: memref<8x8xf32, #tpu.memory_space<vmem>>, %arg4: memref<1x4x32x8xbf16, #tpu.memory_space<vmem>>, %arg5: memref<1x4x1x8xf32, #tpu.memory_space<vmem>>, %arg6: memref<1x4x32x8xbf16, #tpu.memory_space<vmem>>, %arg7: memref<1x4x1x8xf32, #tpu.memory_space<vmem>>, %arg8: memref<1x4x32x8xbf16, #tpu.memory_space<vmem>>, %arg9: memref<1x4x1x8xf32, #tpu.memory_space<vmem>>, %arg10: memref<1x4x8x32xbf16, #tpu.memory_space<vmem>>, %arg11: memref<1x1x32xf32, #tpu.memory_space<vmem>>, %arg12: memref<1x32x64xbf16, #tpu.memory_space<vmem>>, %arg13: memref<1x1x64xf32, #tpu.memory_space<vmem>>, %arg14: memref<1x64x32xbf16, #tpu.memory_space<vmem>>, %arg15: memref<1x1x32xf32, #tpu.memory_space<vmem>>, %arg16: memref<2xf32, #tpu.memory_space<smem>>, %arg17: memref<8x32xf32, #tpu.memory_space<vmem>>, %arg18: memref<8x32xf32, #tpu.memory_space<vmem>>) attributes {dimension_semantics = [#tpu.dimension_semantics<parallel>, #tpu.dimension_semantics<arbitrary>], iteration_bounds = array<i64: 2, 2>, scalar_prefetch = 0 : i64, scratch_operands = 1 : i64, tpu.core_type = #tpu.core_type<tc>, window_params = [{transform_indices = @transform_0, window_bounds = array<i64: 8, 32>}, {pipeline_mode = #tpu.pipeline_mode<synchronous>, transform_indices = @transform_1, window_bounds = array<i64: 8, 8>}, {transform_indices = @transform_2, window_bounds = array<i64: 1, 4, 32, 8>}, {transform_indices = @transform_3, window_bounds = array<i64: 1, 4, 1, 8>}, {transform_indices = @transform_4, window_bounds = array<i64: 1, 4, 32, 8>}, {transform_indices = @transform_5, window_bounds = array<i64: 1, 4, 1, 8>}, {transform_indices = @transform_6, window_bounds = array<i64: 1, 4, 32, 8>}, {transform_indices = @transform_7, window_bounds = array<i64: 1, 4, 1, 8>}, {transform_indices = @transform_8, window_bounds = array<i64: 1, 4, 8, 32>}, {transform_indices = @transform_9, window_bounds = array<i64: 1, 1, 32>}, {transform_indices = @transform_10, window_bounds = array<i64: 1, 32, 64>}, {transform_indices = @transform_11, window_bounds = array<i64: 1, 1, 64>}, {transform_indices = @transform_12, window_bounds = array<i64: 1, 64, 32>}, {transform_indices = @transform_13, window_bounds = array<i64: 1, 1, 32>}, {transform_indices = @transform_14, window_bounds = array<i64: 2>}, {transform_indices = @transform_15, window_bounds = array<i64: 8, 32>}]} {
    %c0_i32 = arith.constant 0 : i32
    %0 = arith.cmpi eq, %arg1, %c0_i32 : i32
    %1 = arith.extui %0 : i1 to i32
    %c0_i32_0 = arith.constant 0 : i32
    %2 = arith.cmpi ne, %1, %c0_i32_0 : i32
    scf.if %2 {
      %c0_154 = arith.constant 0 : index
      %c0_155 = arith.constant 0 : index
      %187 = vector.load %arg2[%c0_154, %c0_155] : memref<8x32xf32, #tpu.memory_space<vmem>>, vector<8x32xf32>
      %c0_156 = arith.constant 0 : index
      %c0_157 = arith.constant 0 : index
      %188 = vector.load %arg18[%c0_156, %c0_157] : memref<8x32xf32, #tpu.memory_space<vmem>>, vector<8x32xf32>
      tpu.vector_store %arg18[%c0_156, %c0_157], %187 {strides = array<i32>} : memref<8x32xf32, #tpu.memory_space<vmem>>, vector<8x32xf32>,
    } else {
    }
    %3 = arith.index_cast %arg1 : i32 to index
    %4 = memref.load %arg16[%3] : memref<2xf32, #tpu.memory_space<smem>>
    %c0 = arith.constant 0 : index
    %c0_1 = arith.constant 0 : index
    %5 = vector.load %arg18[%c0, %c0_1] : memref<8x32xf32, #tpu.memory_space<vmem>>, vector<8x32xf32>
    %6 = arith.truncf %5 : vector<8x32xf32> to vector<8x32xbf16>
    %c0_2 = arith.constant 0 : index
    %c0_3 = arith.constant 0 : index
    %7 = vector.load %arg3[%c0_2, %c0_3] : memref<8x8xf32, #tpu.memory_space<vmem>>, vector<8x8xf32>
    %c0_4 = arith.constant 0 : index
    %c0_5 = arith.constant 0 : index
    %c0_6 = arith.constant 0 : index
    %c0_7 = arith.constant 0 : index
    %8 = vector.load %arg4[%c0_4, %c0_5, %c0_6, %c0_7] : memref<1x4x32x8xbf16, #tpu.memory_space<vmem>>, vector<1x1x32x8xbf16>
    %9 = vector.shape_cast %8 : vector<1x1x32x8xbf16> to vector<32x8xbf16>
    %cst = arith.constant dense<0.000000e+00> : vector<8x8xf32>
    %10 = tpu.matmul %6, %9, %cst {dimension_numbers = #tpu.dot_dimension_numbers<[1], [0], [0], [1], [0, 0, 1, 1], [], []>} : vector<8x32xbf16>, vector<32x8xbf16>, vector<8x8xf32> -> vector<8x8xf32>
    %c0_8 = arith.constant 0 : index
    %c0_9 = arith.constant 0 : index
    %c0_10 = arith.constant 0 : index
    %c0_11 = arith.constant 0 : index
    %11 = vector.load %arg5[%c0_8, %c0_9, %c0_10, %c0_11] : memref<1x4x1x8xf32, #tpu.memory_space<vmem>>, vector<1x1x1x8xf32>
    %12 = vector.shape_cast %11 : vector<1x1x1x8xf32> to vector<1x8xf32>
    %13 = vector.broadcast %12 : vector<1x8xf32> to vector<8x8xf32>
    %14 = arith.addf %10, %13 : vector<8x8xf32>
    %c0_12 = arith.constant 0 : index
    %c0_13 = arith.constant 0 : index
    %c0_14 = arith.constant 0 : index
    %c0_15 = arith.constant 0 : index
    %15 = vector.load %arg6[%c0_12, %c0_13, %c0_14, %c0_15] : memref<1x4x32x8xbf16, #tpu.memory_space<vmem>>, vector<1x1x32x8xbf16>
    %16 = vector.shape_cast %15 : vector<1x1x32x8xbf16> to vector<32x8xbf16>
    %cst_16 = arith.constant dense<0.000000e+00> : vector<8x8xf32>
    %17 = tpu.matmul %6, %16, %cst_16 {dimension_numbers = #tpu.dot_dimension_numbers<[1], [0], [0], [1], [0, 0, 1, 1], [], []>} : vector<8x32xbf16>, vector<32x8xbf16>, vector<8x8xf32> -> vector<8x8xf32>
    %c0_17 = arith.constant 0 : index
    %c0_18 = arith.constant 0 : index
    %c0_19 = arith.constant 0 : index
    %c0_20 = arith.constant 0 : index
    %18 = vector.load %arg7[%c0_17, %c0_18, %c0_19, %c0_20] : memref<1x4x1x8xf32, #tpu.memory_space<vmem>>, vector<1x1x1x8xf32>
    %19 = vector.shape_cast %18 : vector<1x1x1x8xf32> to vector<1x8xf32>
    %20 = vector.broadcast %19 : vector<1x8xf32> to vector<8x8xf32>
    %21 = arith.addf %17, %20 : vector<8x8xf32>
    %c0_21 = arith.constant 0 : index
    %c0_22 = arith.constant 0 : index
    %c0_23 = arith.constant 0 : index
    %c0_24 = arith.constant 0 : index
    %22 = vector.load %arg8[%c0_21, %c0_22, %c0_23, %c0_24] : memref<1x4x32x8xbf16, #tpu.memory_space<vmem>>, vector<1x1x32x8xbf16>
    %23 = vector.shape_cast %22 : vector<1x1x32x8xbf16> to vector<32x8xbf16>
    %cst_25 = arith.constant dense<0.000000e+00> : vector<8x8xf32>
    %24 = tpu.matmul %6, %23, %cst_25 {dimension_numbers = #tpu.dot_dimension_numbers<[1], [0], [0], [1], [0, 0, 1, 1], [], []>} : vector<8x32xbf16>, vector<32x8xbf16>, vector<8x8xf32> -> vector<8x8xf32>
    %c0_26 = arith.constant 0 : index
    %c0_27 = arith.constant 0 : index
    %c0_28 = arith.constant 0 : index
    %c0_29 = arith.constant 0 : index
    %25 = vector.load %arg9[%c0_26, %c0_27, %c0_28, %c0_29] : memref<1x4x1x8xf32, #tpu.memory_space<vmem>>, vector<1x1x1x8xf32>
    %26 = vector.shape_cast %25 : vector<1x1x1x8xf32> to vector<1x8xf32>
    %27 = vector.broadcast %26 : vector<1x8xf32> to vector<8x8xf32>
    %28 = arith.addf %24, %27 : vector<8x8xf32>
    %c0_30 = arith.constant 0 : index
    %c1 = arith.constant 1 : index
    %c0_31 = arith.constant 0 : index
    %c0_32 = arith.constant 0 : index
    %29 = vector.load %arg4[%c0_30, %c1, %c0_31, %c0_32] : memref<1x4x32x8xbf16, #tpu.memory_space<vmem>>, vector<1x1x32x8xbf16>
    %30 = vector.shape_cast %29 : vector<1x1x32x8xbf16> to vector<32x8xbf16>
    %cst_33 = arith.constant dense<0.000000e+00> : vector<8x8xf32>
    %31 = tpu.matmul %6, %30, %cst_33 {dimension_numbers = #tpu.dot_dimension_numbers<[1], [0], [0], [1], [0, 0, 1, 1], [], []>} : vector<8x32xbf16>, vector<32x8xbf16>, vector<8x8xf32> -> vector<8x8xf32>
    %c0_34 = arith.constant 0 : index
    %c1_35 = arith.constant 1 : index
    %c0_36 = arith.constant 0 : index
    %c0_37 = arith.constant 0 : index
    %32 = vector.load %arg5[%c0_34, %c1_35, %c0_36, %c0_37] : memref<1x4x1x8xf32, #tpu.memory_space<vmem>>, vector<1x1x1x8xf32>
    %33 = vector.shape_cast %32 : vector<1x1x1x8xf32> to vector<1x8xf32>
    %34 = vector.broadcast %33 : vector<1x8xf32> to vector<8x8xf32>
    %35 = arith.addf %31, %34 : vector<8x8xf32>
    %c0_38 = arith.constant 0 : index
    %c1_39 = arith.constant 1 : index
    %c0_40 = arith.constant 0 : index
    %c0_41 = arith.constant 0 : index
    %36 = vector.load %arg6[%c0_38, %c1_39, %c0_40, %c0_41] : memref<1x4x32x8xbf16, #tpu.memory_space<vmem>>, vector<1x1x32x8xbf16>
    %37 = vector.shape_cast %36 : vector<1x1x32x8xbf16> to vector<32x8xbf16>
    %cst_42 = arith.constant dense<0.000000e+00> : vector<8x8xf32>
    %38 = tpu.matmul %6, %37, %cst_42 {dimension_numbers = #tpu.dot_dimension_numbers<[1], [0], [0], [1], [0, 0, 1, 1], [], []>} : vector<8x32xbf16>, vector<32x8xbf16>, vector<8x8xf32> -> vector<8x8xf32>
    %c0_43 = arith.constant 0 : index
    %c1_44 = arith.constant 1 : index
    %c0_45 = arith.constant 0 : index
    %c0_46 = arith.constant 0 : index
    %39 = vector.load %arg7[%c0_43, %c1_44, %c0_45, %c0_46] : memref<1x4x1x8xf32, #tpu.memory_space<vmem>>, vector<1x1x1x8xf32>
    %40 = vector.shape_cast %39 : vector<1x1x1x8xf32> to vector<1x8xf32>
    %41 = vector.broadcast %40 : vector<1x8xf32> to vector<8x8xf32>
    %42 = arith.addf %38, %41 : vector<8x8xf32>
    %c0_47 = arith.constant 0 : index
    %c1_48 = arith.constant 1 : index
    %c0_49 = arith.constant 0 : index
    %c0_50 = arith.constant 0 : index
    %43 = vector.load %arg8[%c0_47, %c1_48, %c0_49, %c0_50] : memref<1x4x32x8xbf16, #tpu.memory_space<vmem>>, vector<1x1x32x8xbf16>
    %44 = vector.shape_cast %43 : vector<1x1x32x8xbf16> to vector<32x8xbf16>
    %cst_51 = arith.constant dense<0.000000e+00> : vector<8x8xf32>
    %45 = tpu.matmul %6, %44, %cst_51 {dimension_numbers = #tpu.dot_dimension_numbers<[1], [0], [0], [1], [0, 0, 1, 1], [], []>} : vector<8x32xbf16>, vector<32x8xbf16>, vector<8x8xf32> -> vector<8x8xf32>
    %c0_52 = arith.constant 0 : index
    %c1_53 = arith.constant 1 : index
    %c0_54 = arith.constant 0 : index
    %c0_55 = arith.constant 0 : index
    %46 = vector.load %arg9[%c0_52, %c1_53, %c0_54, %c0_55] : memref<1x4x1x8xf32, #tpu.memory_space<vmem>>, vector<1x1x1x8xf32>
    %47 = vector.shape_cast %46 : vector<1x1x1x8xf32> to vector<1x8xf32>
    %48 = vector.broadcast %47 : vector<1x8xf32> to vector<8x8xf32>
    %49 = arith.addf %45, %48 : vector<8x8xf32>
    %c0_56 = arith.constant 0 : index
    %c2 = arith.constant 2 : index
    %c0_57 = arith.constant 0 : index
    %c0_58 = arith.constant 0 : index
    %50 = vector.load %arg4[%c0_56, %c2, %c0_57, %c0_58] : memref<1x4x32x8xbf16, #tpu.memory_space<vmem>>, vector<1x1x32x8xbf16>
    %51 = vector.shape_cast %50 : vector<1x1x32x8xbf16> to vector<32x8xbf16>
    %cst_59 = arith.constant dense<0.000000e+00> : vector<8x8xf32>
    %52 = tpu.matmul %6, %51, %cst_59 {dimension_numbers = #tpu.dot_dimension_numbers<[1], [0], [0], [1], [0, 0, 1, 1], [], []>} : vector<8x32xbf16>, vector<32x8xbf16>, vector<8x8xf32> -> vector<8x8xf32>
    %c0_60 = arith.constant 0 : index
    %c2_61 = arith.constant 2 : index
    %c0_62 = arith.constant 0 : index
    %c0_63 = arith.constant 0 : index
    %53 = vector.load %arg5[%c0_60, %c2_61, %c0_62, %c0_63] : memref<1x4x1x8xf32, #tpu.memory_space<vmem>>, vector<1x1x1x8xf32>
    %54 = vector.shape_cast %53 : vector<1x1x1x8xf32> to vector<1x8xf32>
    %55 = vector.broadcast %54 : vector<1x8xf32> to vector<8x8xf32>
    %56 = arith.addf %52, %55 : vector<8x8xf32>
    %c0_64 = arith.constant 0 : index
    %c2_65 = arith.constant 2 : index
    %c0_66 = arith.constant 0 : index
    %c0_67 = arith.constant 0 : index
    %57 = vector.load %arg6[%c0_64, %c2_65, %c0_66, %c0_67] : memref<1x4x32x8xbf16, #tpu.memory_space<vmem>>, vector<1x1x32x8xbf16>
    %58 = vector.shape_cast %57 : vector<1x1x32x8xbf16> to vector<32x8xbf16>
    %cst_68 = arith.constant dense<0.000000e+00> : vector<8x8xf32>
    %59 = tpu.matmul %6, %58, %cst_68 {dimension_numbers = #tpu.dot_dimension_numbers<[1], [0], [0], [1], [0, 0, 1, 1], [], []>} : vector<8x32xbf16>, vector<32x8xbf16>, vector<8x8xf32> -> vector<8x8xf32>
    %c0_69 = arith.constant 0 : index
    %c2_70 = arith.constant 2 : index
    %c0_71 = arith.constant 0 : index
    %c0_72 = arith.constant 0 : index
    %60 = vector.load %arg7[%c0_69, %c2_70, %c0_71, %c0_72] : memref<1x4x1x8xf32, #tpu.memory_space<vmem>>, vector<1x1x1x8xf32>
    %61 = vector.shape_cast %60 : vector<1x1x1x8xf32> to vector<1x8xf32>
    %62 = vector.broadcast %61 : vector<1x8xf32> to vector<8x8xf32>
    %63 = arith.addf %59, %62 : vector<8x8xf32>
    %c0_73 = arith.constant 0 : index
    %c2_74 = arith.constant 2 : index
    %c0_75 = arith.constant 0 : index
    %c0_76 = arith.constant 0 : index
    %64 = vector.load %arg8[%c0_73, %c2_74, %c0_75, %c0_76] : memref<1x4x32x8xbf16, #tpu.memory_space<vmem>>, vector<1x1x32x8xbf16>
    %65 = vector.shape_cast %64 : vector<1x1x32x8xbf16> to vector<32x8xbf16>
    %cst_77 = arith.constant dense<0.000000e+00> : vector<8x8xf32>
    %66 = tpu.matmul %6, %65, %cst_77 {dimension_numbers = #tpu.dot_dimension_numbers<[1], [0], [0], [1], [0, 0, 1, 1], [], []>} : vector<8x32xbf16>, vector<32x8xbf16>, vector<8x8xf32> -> vector<8x8xf32>
    %c0_78 = arith.constant 0 : index
    %c2_79 = arith.constant 2 : index
    %c0_80 = arith.constant 0 : index
    %c0_81 = arith.constant 0 : index
    %67 = vector.load %arg9[%c0_78, %c2_79, %c0_80, %c0_81] : memref<1x4x1x8xf32, #tpu.memory_space<vmem>>, vector<1x1x1x8xf32>
    %68 = vector.shape_cast %67 : vector<1x1x1x8xf32> to vector<1x8xf32>
    %69 = vector.broadcast %68 : vector<1x8xf32> to vector<8x8xf32>
    %70 = arith.addf %66, %69 : vector<8x8xf32>
    %c0_82 = arith.constant 0 : index
    %c3 = arith.constant 3 : index
    %c0_83 = arith.constant 0 : index
    %c0_84 = arith.constant 0 : index
    %71 = vector.load %arg4[%c0_82, %c3, %c0_83, %c0_84] : memref<1x4x32x8xbf16, #tpu.memory_space<vmem>>, vector<1x1x32x8xbf16>
    %72 = vector.shape_cast %71 : vector<1x1x32x8xbf16> to vector<32x8xbf16>
    %cst_85 = arith.constant dense<0.000000e+00> : vector<8x8xf32>
    %73 = tpu.matmul %6, %72, %cst_85 {dimension_numbers = #tpu.dot_dimension_numbers<[1], [0], [0], [1], [0, 0, 1, 1], [], []>} : vector<8x32xbf16>, vector<32x8xbf16>, vector<8x8xf32> -> vector<8x8xf32>
    %c0_86 = arith.constant 0 : index
    %c3_87 = arith.constant 3 : index
    %c0_88 = arith.constant 0 : index
    %c0_89 = arith.constant 0 : index
    %74 = vector.load %arg5[%c0_86, %c3_87, %c0_88, %c0_89] : memref<1x4x1x8xf32, #tpu.memory_space<vmem>>, vector<1x1x1x8xf32>
    %75 = vector.shape_cast %74 : vector<1x1x1x8xf32> to vector<1x8xf32>
    %76 = vector.broadcast %75 : vector<1x8xf32> to vector<8x8xf32>
    %77 = arith.addf %73, %76 : vector<8x8xf32>
    %c0_90 = arith.constant 0 : index
    %c3_91 = arith.constant 3 : index
    %c0_92 = arith.constant 0 : index
    %c0_93 = arith.constant 0 : index
    %78 = vector.load %arg6[%c0_90, %c3_91, %c0_92, %c0_93] : memref<1x4x32x8xbf16, #tpu.memory_space<vmem>>, vector<1x1x32x8xbf16>
    %79 = vector.shape_cast %78 : vector<1x1x32x8xbf16> to vector<32x8xbf16>
    %cst_94 = arith.constant dense<0.000000e+00> : vector<8x8xf32>
    %80 = tpu.matmul %6, %79, %cst_94 {dimension_numbers = #tpu.dot_dimension_numbers<[1], [0], [0], [1], [0, 0, 1, 1], [], []>} : vector<8x32xbf16>, vector<32x8xbf16>, vector<8x8xf32> -> vector<8x8xf32>
    %c0_95 = arith.constant 0 : index
    %c3_96 = arith.constant 3 : index
    %c0_97 = arith.constant 0 : index
    %c0_98 = arith.constant 0 : index
    %81 = vector.load %arg7[%c0_95, %c3_96, %c0_97, %c0_98] : memref<1x4x1x8xf32, #tpu.memory_space<vmem>>, vector<1x1x1x8xf32>
    %82 = vector.shape_cast %81 : vector<1x1x1x8xf32> to vector<1x8xf32>
    %83 = vector.broadcast %82 : vector<1x8xf32> to vector<8x8xf32>
    %84 = arith.addf %80, %83 : vector<8x8xf32>
    %c0_99 = arith.constant 0 : index
    %c3_100 = arith.constant 3 : index
    %c0_101 = arith.constant 0 : index
    %c0_102 = arith.constant 0 : index
    %85 = vector.load %arg8[%c0_99, %c3_100, %c0_101, %c0_102] : memref<1x4x32x8xbf16, #tpu.memory_space<vmem>>, vector<1x1x32x8xbf16>
    %86 = vector.shape_cast %85 : vector<1x1x32x8xbf16> to vector<32x8xbf16>
    %cst_103 = arith.constant dense<0.000000e+00> : vector<8x8xf32>
    %87 = tpu.matmul %6, %86, %cst_103 {dimension_numbers = #tpu.dot_dimension_numbers<[1], [0], [0], [1], [0, 0, 1, 1], [], []>} : vector<8x32xbf16>, vector<32x8xbf16>, vector<8x8xf32> -> vector<8x8xf32>
    %c0_104 = arith.constant 0 : index
    %c3_105 = arith.constant 3 : index
    %c0_106 = arith.constant 0 : index
    %c0_107 = arith.constant 0 : index
    %88 = vector.load %arg9[%c0_104, %c3_105, %c0_106, %c0_107] : memref<1x4x1x8xf32, #tpu.memory_space<vmem>>, vector<1x1x1x8xf32>
    %89 = vector.shape_cast %88 : vector<1x1x1x8xf32> to vector<1x8xf32>
    %90 = vector.broadcast %89 : vector<1x8xf32> to vector<8x8xf32>
    %91 = arith.addf %87, %90 : vector<8x8xf32>
    %92 = vector.shape_cast %14 : vector<8x8xf32> to vector<1x8x8xf32>
    %93 = vector.shape_cast %35 : vector<8x8xf32> to vector<1x8x8xf32>
    %94 = vector.shape_cast %56 : vector<8x8xf32> to vector<1x8x8xf32>
    %95 = vector.shape_cast %77 : vector<8x8xf32> to vector<1x8x8xf32>
    %96 = tpu.concatenate %92, %93, %94, %95 in 0 : vector<1x8x8xf32>, vector<1x8x8xf32>, vector<1x8x8xf32>, vector<1x8x8xf32> -> vector<4x8x8xf32>
    %97 = arith.truncf %96 : vector<4x8x8xf32> to vector<4x8x8xbf16>
    %98 = vector.shape_cast %21 : vector<8x8xf32> to vector<1x8x8xf32>
    %99 = vector.shape_cast %42 : vector<8x8xf32> to vector<1x8x8xf32>
    %100 = vector.shape_cast %63 : vector<8x8xf32> to vector<1x8x8xf32>
    %101 = vector.shape_cast %84 : vector<8x8xf32> to vector<1x8x8xf32>
    %102 = tpu.concatenate %98, %99, %100, %101 in 0 : vector<1x8x8xf32>, vector<1x8x8xf32>, vector<1x8x8xf32>, vector<1x8x8xf32> -> vector<4x8x8xf32>
    %103 = arith.truncf %102 : vector<4x8x8xf32> to vector<4x8x8xbf16>
    %104 = vector.shape_cast %28 : vector<8x8xf32> to vector<1x8x8xf32>
    %105 = vector.shape_cast %49 : vector<8x8xf32> to vector<1x8x8xf32>
    %106 = vector.shape_cast %70 : vector<8x8xf32> to vector<1x8x8xf32>
    %107 = vector.shape_cast %91 : vector<8x8xf32> to vector<1x8x8xf32>
    %108 = tpu.concatenate %104, %105, %106, %107 in 0 : vector<1x8x8xf32>, vector<1x8x8xf32>, vector<1x8x8xf32>, vector<1x8x8xf32> -> vector<4x8x8xf32>
    %109 = arith.truncf %108 : vector<4x8x8xf32> to vector<4x8x8xbf16>
    "tpu.trace_start"() <{level = 10 : i32, message = "gqd,gkd->gqk"}> : () -> ()
    %cst_108 = arith.constant dense<0.000000e+00> : vector<4x8x8xf32>
    %110 = tpu.matmul %97, %103, %cst_108 {dimension_numbers = #tpu.dot_dimension_numbers<[2], [2], [1], [1], [0, 0, 0, 1, 1, 1], [0], [0]>} : vector<4x8x8xbf16>, vector<4x8x8xbf16>, vector<4x8x8xf32> -> vector<4x8x8xf32>
    "tpu.trace_stop"() : () -> ()
    %cst_109 = arith.constant 0.353553385 : f32
    %111 = vector.broadcast %cst_109 : f32 to vector<4x8x8xf32>
    %112 = arith.mulf %110, %111 : vector<4x8x8xf32>
    %113 = vector.shape_cast %7 : vector<8x8xf32> to vector<1x8x8xf32>
    %114 = vector.broadcast %113 : vector<1x8x8xf32> to vector<4x8x8xf32>
    %115 = arith.addf %112, %114 : vector<4x8x8xf32>
    %cst_110 = arith.constant dense<0xFF800000> : vector<4x8xf32>
    %116 = vector.multi_reduction <maximumf>, %115, %cst_110 [2] : vector<4x8x8xf32> to vector<4x8xf32>
    %117 = vector.shape_cast %116 : vector<4x8xf32> to vector<4x8x1xf32>
    %118 = vector.broadcast %117 : vector<4x8x1xf32> to vector<4x8x8xf32>
    %119 = arith.subf %115, %118 : vector<4x8x8xf32>
    %120 = math.exp %119 : vector<4x8x8xf32>
    %cst_111 = arith.constant dense<0.000000e+00> : vector<4x8xf32>
    %121 = vector.multi_reduction <add>, %120, %cst_111 [2] : vector<4x8x8xf32> to vector<4x8xf32>
    %122 = vector.shape_cast %121 : vector<4x8xf32> to vector<4x8x1xf32>
    %123 = tpu.reciprocal %122 {approx = true} : vector<4x8x1xf32> -> vector<4x8x1xf32>
    %124 = vector.broadcast %123 : vector<4x8x1xf32> to vector<4x8x8xf32>
    %125 = arith.mulf %120, %124 : vector<4x8x8xf32>
    %126 = arith.truncf %125 : vector<4x8x8xf32> to vector<4x8x8xbf16>
    "tpu.trace_start"() <{level = 10 : i32, message = "gqk,gkd->gqd"}> : () -> ()
    %cst_112 = arith.constant dense<0.000000e+00> : vector<4x8x8xf32>
    %127 = tpu.matmul %126, %109, %cst_112 {dimension_numbers = #tpu.dot_dimension_numbers<[2], [1], [1], [2], [0, 0, 0, 1, 1, 2], [0], [0]>} : vector<4x8x8xbf16>, vector<4x8x8xbf16>, vector<4x8x8xf32> -> vector<4x8x8xf32>
    "tpu.trace_stop"() : () -> ()
    %128 = vector.extract_strided_slice %127 {offsets = [0, 0, 0], sizes = [1, 8, 8], strides = [1, 1, 1]} : vector<4x8x8xf32> to vector<1x8x8xf32>
    %129 = vector.shape_cast %128 : vector<1x8x8xf32> to vector<8x8xf32>
    %130 = arith.truncf %129 : vector<8x8xf32> to vector<8x8xbf16>
    %c0_113 = arith.constant 0 : index
    %c0_114 = arith.constant 0 : index
    %c0_115 = arith.constant 0 : index
    %c0_116 = arith.constant 0 : index
    %131 = vector.load %arg10[%c0_113, %c0_114, %c0_115, %c0_116] : memref<1x4x8x32xbf16, #tpu.memory_space<vmem>>, vector<1x1x8x32xbf16>
    %132 = vector.shape_cast %131 : vector<1x1x8x32xbf16> to vector<8x32xbf16>
    %cst_117 = arith.constant dense<0.000000e+00> : vector<8x32xf32>
    %133 = tpu.matmul %130, %132, %cst_117 {dimension_numbers = #tpu.dot_dimension_numbers<[1], [0], [0], [1], [0, 0, 1, 1], [], []>} : vector<8x8xbf16>, vector<8x32xbf16>, vector<8x32xf32> -> vector<8x32xf32>
    %134 = vector.extract_strided_slice %127 {offsets = [1, 0, 0], sizes = [1, 8, 8], strides = [1, 1, 1]} : vector<4x8x8xf32> to vector<1x8x8xf32>
    %135 = vector.shape_cast %134 : vector<1x8x8xf32> to vector<8x8xf32>
    %136 = arith.truncf %135 : vector<8x8xf32> to vector<8x8xbf16>
    %c0_118 = arith.constant 0 : index
    %c1_119 = arith.constant 1 : index
    %c0_120 = arith.constant 0 : index
    %c0_121 = arith.constant 0 : index
    %137 = vector.load %arg10[%c0_118, %c1_119, %c0_120, %c0_121] : memref<1x4x8x32xbf16, #tpu.memory_space<vmem>>, vector<1x1x8x32xbf16>
    %138 = vector.shape_cast %137 : vector<1x1x8x32xbf16> to vector<8x32xbf16>
    %cst_122 = arith.constant dense<0.000000e+00> : vector<8x32xf32>
    %139 = tpu.matmul %136, %138, %cst_122 {dimension_numbers = #tpu.dot_dimension_numbers<[1], [0], [0], [1], [0, 0, 1, 1], [], []>} : vector<8x8xbf16>, vector<8x32xbf16>, vector<8x32xf32> -> vector<8x32xf32>
    %140 = arith.addf %133, %139 : vector<8x32xf32>
    %141 = vector.extract_strided_slice %127 {offsets = [2, 0, 0], sizes = [1, 8, 8], strides = [1, 1, 1]} : vector<4x8x8xf32> to vector<1x8x8xf32>
    %142 = vector.shape_cast %141 : vector<1x8x8xf32> to vector<8x8xf32>
    %143 = arith.truncf %142 : vector<8x8xf32> to vector<8x8xbf16>
    %c0_123 = arith.constant 0 : index
    %c2_124 = arith.constant 2 : index
    %c0_125 = arith.constant 0 : index
    %c0_126 = arith.constant 0 : index
    %144 = vector.load %arg10[%c0_123, %c2_124, %c0_125, %c0_126] : memref<1x4x8x32xbf16, #tpu.memory_space<vmem>>, vector<1x1x8x32xbf16>
    %145 = vector.shape_cast %144 : vector<1x1x8x32xbf16> to vector<8x32xbf16>
    %cst_127 = arith.constant dense<0.000000e+00> : vector<8x32xf32>
    %146 = tpu.matmul %143, %145, %cst_127 {dimension_numbers = #tpu.dot_dimension_numbers<[1], [0], [0], [1], [0, 0, 1, 1], [], []>} : vector<8x8xbf16>, vector<8x32xbf16>, vector<8x32xf32> -> vector<8x32xf32>
    %147 = arith.addf %140, %146 : vector<8x32xf32>
    %148 = vector.extract_strided_slice %127 {offsets = [3, 0, 0], sizes = [1, 8, 8], strides = [1, 1, 1]} : vector<4x8x8xf32> to vector<1x8x8xf32>
    %149 = vector.shape_cast %148 : vector<1x8x8xf32> to vector<8x8xf32>
    %150 = arith.truncf %149 : vector<8x8xf32> to vector<8x8xbf16>
    %c0_128 = arith.constant 0 : index
    %c3_129 = arith.constant 3 : index
    %c0_130 = arith.constant 0 : index
    %c0_131 = arith.constant 0 : index
    %151 = vector.load %arg10[%c0_128, %c3_129, %c0_130, %c0_131] : memref<1x4x8x32xbf16, #tpu.memory_space<vmem>>, vector<1x1x8x32xbf16>
    %152 = vector.shape_cast %151 : vector<1x1x8x32xbf16> to vector<8x32xbf16>
    %cst_132 = arith.constant dense<0.000000e+00> : vector<8x32xf32>
    %153 = tpu.matmul %150, %152, %cst_132 {dimension_numbers = #tpu.dot_dimension_numbers<[1], [0], [0], [1], [0, 0, 1, 1], [], []>} : vector<8x8xbf16>, vector<8x32xbf16>, vector<8x32xf32> -> vector<8x32xf32>
    %154 = arith.addf %147, %153 : vector<8x32xf32>
    %c0_133 = arith.constant 0 : index
    %c0_134 = arith.constant 0 : index
    %c0_135 = arith.constant 0 : index
    %155 = vector.load %arg11[%c0_133, %c0_134, %c0_135] : memref<1x1x32xf32, #tpu.memory_space<vmem>>, vector<1x1x32xf32>
    %156 = vector.shape_cast %155 : vector<1x1x32xf32> to vector<1x32xf32>
    %157 = vector.broadcast %156 : vector<1x32xf32> to vector<8x32xf32>
    %158 = arith.addf %154, %157 : vector<8x32xf32>
    %159 = vector.broadcast %4 : f32 to vector<8x32xf32>
    %160 = arith.mulf %159, %158 : vector<8x32xf32>
    %161 = arith.addf %5, %160 : vector<8x32xf32>
    %162 = arith.truncf %161 : vector<8x32xf32> to vector<8x32xbf16>
    %c0_136 = arith.constant 0 : index
    %c0_137 = arith.constant 0 : index
    %c0_138 = arith.constant 0 : index
    %163 = vector.load %arg12[%c0_136, %c0_137, %c0_138] : memref<1x32x64xbf16, #tpu.memory_space<vmem>>, vector<1x32x64xbf16>
    %164 = vector.shape_cast %163 : vector<1x32x64xbf16> to vector<32x64xbf16>
    %cst_139 = arith.constant dense<0.000000e+00> : vector<8x64xf32>
    %165 = tpu.matmul %162, %164, %cst_139 {dimension_numbers = #tpu.dot_dimension_numbers<[1], [0], [0], [1], [0, 0, 1, 1], [], []>} : vector<8x32xbf16>, vector<32x64xbf16>, vector<8x64xf32> -> vector<8x64xf32>
    %c0_140 = arith.constant 0 : index
    %c0_141 = arith.constant 0 : index
    %c0_142 = arith.constant 0 : index
    %166 = vector.load %arg13[%c0_140, %c0_141, %c0_142] : memref<1x1x64xf32, #tpu.memory_space<vmem>>, vector<1x1x64xf32>
    %167 = vector.shape_cast %166 : vector<1x1x64xf32> to vector<1x64xf32>
    %168 = vector.broadcast %167 : vector<1x64xf32> to vector<8x64xf32>
    %169 = arith.addf %165, %168 : vector<8x64xf32>
    %cst_143 = arith.constant 0.000000e+00 : f32
    %170 = vector.broadcast %cst_143 : f32 to vector<8x64xf32>
    %171 = arith.maximumf %169, %170 : vector<8x64xf32>
    %172 = arith.truncf %171 : vector<8x64xf32> to vector<8x64xbf16>
    %c0_144 = arith.constant 0 : index
    %c0_145 = arith.constant 0 : index
    %c0_146 = arith.constant 0 : index
    %173 = vector.load %arg14[%c0_144, %c0_145, %c0_146] : memref<1x64x32xbf16, #tpu.memory_space<vmem>>, vector<1x64x32xbf16>
    %174 = vector.shape_cast %173 : vector<1x64x32xbf16> to vector<64x32xbf16>
    %cst_147 = arith.constant dense<0.000000e+00> : vector<8x32xf32>
    %175 = tpu.matmul %172, %174, %cst_147 {dimension_numbers = #tpu.dot_dimension_numbers<[1], [0], [0], [1], [0, 0, 1, 1], [], []>} : vector<8x64xbf16>, vector<64x32xbf16>, vector<8x32xf32> -> vector<8x32xf32>
    %c0_148 = arith.constant 0 : index
    %c0_149 = arith.constant 0 : index
    %c0_150 = arith.constant 0 : index
    %176 = vector.load %arg15[%c0_148, %c0_149, %c0_150] : memref<1x1x32xf32, #tpu.memory_space<vmem>>, vector<1x1x32xf32>
    %177 = vector.shape_cast %176 : vector<1x1x32xf32> to vector<1x32xf32>
    %178 = vector.broadcast %177 : vector<1x32xf32> to vector<8x32xf32>
    %179 = arith.addf %175, %178 : vector<8x32xf32>
    %180 = vector.broadcast %4 : f32 to vector<8x32xf32>
    %181 = arith.mulf %180, %179 : vector<8x32xf32>
    %182 = arith.addf %161, %181 : vector<8x32xf32>
    %c0_151 = arith.constant 0 : index
    %c0_152 = arith.constant 0 : index
    %183 = vector.load %arg18[%c0_151, %c0_152] : memref<8x32xf32, #tpu.memory_space<vmem>>, vector<8x32xf32>
    tpu.vector_store %arg18[%c0_151, %c0_152], %182 {strides = array<i32>} : memref<8x32xf32, #tpu.memory_space<vmem>>, vector<8x32xf32>,
    %c1_i32 = arith.constant 1 : i32
    %184 = arith.cmpi eq, %arg1, %c1_i32 : i32
    %185 = arith.extui %184 : i1 to i32
    %c0_i32_153 = arith.constant 0 : i32
    %186 = arith.cmpi ne, %185, %c0_i32_153 : i32
    scf.if %186 {
      %c0_154 = arith.constant 0 : index
      %c0_155 = arith.constant 0 : index
      %187 = vector.load %arg17[%c0_154, %c0_155] : memref<8x32xf32, #tpu.memory_space<vmem>>, vector<8x32xf32>
      tpu.vector_store %arg17[%c0_154, %c0_155], %182 {strides = array<i32>} : memref<8x32xf32, #tpu.memory_space<vmem>>, vector<8x32xf32>,
    } else {
    }
    return
  }
  func.func @transform_0(%arg0: i32, %arg1: i32) -> (i32, i32) {
    %c0_i32 = arith.constant 0 : i32
    %c0_i32_0 = arith.constant 0 : i32
    return %arg0, %c0_i32 : i32, i32
  }
  func.func @transform_1(%arg0: i32, %arg1: i32) -> (i32, i32) {
    %c0_i32 = arith.constant 0 : i32
    %c0_i32_0 = arith.constant 0 : i32
    %c0_i32_1 = arith.constant 0 : i32
    return %c0_i32, %c0_i32_0 : i32, i32
  }
  func.func @transform_2(%arg0: i32, %arg1: i32) -> (i32, i32, i32, i32) {
    %c0_i32 = arith.constant 0 : i32
    %c0_i32_0 = arith.constant 0 : i32
    %c0_i32_1 = arith.constant 0 : i32
    %c0_i32_2 = arith.constant 0 : i32
    return %arg1, %c0_i32, %c0_i32_0, %c0_i32_1 : i32, i32, i32, i32
  }
  func.func @transform_3(%arg0: i32, %arg1: i32) -> (i32, i32, i32, i32) {
    %c0_i32 = arith.constant 0 : i32
    %c0_i32_0 = arith.constant 0 : i32
    %c0_i32_1 = arith.constant 0 : i32
    %c0_i32_2 = arith.constant 0 : i32
    return %arg1, %c0_i32, %c0_i32_0, %c0_i32_1 : i32, i32, i32, i32
  }
  func.func @transform_4(%arg0: i32, %arg1: i32) -> (i32, i32, i32, i32) {
    %c0_i32 = arith.constant 0 : i32
    %c0_i32_0 = arith.constant 0 : i32
    %c0_i32_1 = arith.constant 0 : i32
    %c0_i32_2 = arith.constant 0 : i32
    return %arg1, %c0_i32, %c0_i32_0, %c0_i32_1 : i32, i32, i32, i32
  }
  func.func @transform_5(%arg0: i32, %arg1: i32) -> (i32, i32, i32, i32) {
    %c0_i32 = arith.constant 0 : i32
    %c0_i32_0 = arith.constant 0 : i32
    %c0_i32_1 = arith.constant 0 : i32
    %c0_i32_2 = arith.constant 0 : i32
    return %arg1, %c0_i32, %c0_i32_0, %c0_i32_1 : i32, i32, i32, i32
  }
  func.func @transform_6(%arg0: i32, %arg1: i32) -> (i32, i32, i32, i32) {
    %c0_i32 = arith.constant 0 : i32
    %c0_i32_0 = arith.constant 0 : i32
    %c0_i32_1 = arith.constant 0 : i32
    %c0_i32_2 = arith.constant 0 : i32
    return %arg1, %c0_i32, %c0_i32_0, %c0_i32_1 : i32, i32, i32, i32
  }
  func.func @transform_7(%arg0: i32, %arg1: i32) -> (i32, i32, i32, i32) {
    %c0_i32 = arith.constant 0 : i32
    %c0_i32_0 = arith.constant 0 : i32
    %c0_i32_1 = arith.constant 0 : i32
    %c0_i32_2 = arith.constant 0 : i32
    return %arg1, %c0_i32, %c0_i32_0, %c0_i32_1 : i32, i32, i32, i32
  }
  func.func @transform_8(%arg0: i32, %arg1: i32) -> (i32, i32, i32, i32) {
    %c0_i32 = arith.constant 0 : i32
    %c0_i32_0 = arith.constant 0 : i32
    %c0_i32_1 = arith.constant 0 : i32
    %c0_i32_2 = arith.constant 0 : i32
    return %arg1, %c0_i32, %c0_i32_0, %c0_i32_1 : i32, i32, i32, i32
  }
  func.func @transform_9(%arg0: i32, %arg1: i32) -> (i32, i32, i32) {
    %c0_i32 = arith.constant 0 : i32
    %c0_i32_0 = arith.constant 0 : i32
    %c0_i32_1 = arith.constant 0 : i32
    return %arg1, %c0_i32, %c0_i32_0 : i32, i32, i32
  }
  func.func @transform_10(%arg0: i32, %arg1: i32) -> (i32, i32, i32) {
    %c0_i32 = arith.constant 0 : i32
    %c0_i32_0 = arith.constant 0 : i32
    %c0_i32_1 = arith.constant 0 : i32
    return %arg1, %c0_i32, %c0_i32_0 : i32, i32, i32
  }
  func.func @transform_11(%arg0: i32, %arg1: i32) -> (i32, i32, i32) {
    %c0_i32 = arith.constant 0 : i32
    %c0_i32_0 = arith.constant 0 : i32
    %c0_i32_1 = arith.constant 0 : i32
    return %arg1, %c0_i32, %c0_i32_0 : i32, i32, i32
  }
  func.func @transform_12(%arg0: i32, %arg1: i32) -> (i32, i32, i32) {
    %c0_i32 = arith.constant 0 : i32
    %c0_i32_0 = arith.constant 0 : i32
    %c0_i32_1 = arith.constant 0 : i32
    return %arg1, %c0_i32, %c0_i32_0 : i32, i32, i32
  }
  func.func @transform_13(%arg0: i32, %arg1: i32) -> (i32, i32, i32) {
    %c0_i32 = arith.constant 0 : i32
    %c0_i32_0 = arith.constant 0 : i32
    %c0_i32_1 = arith.constant 0 : i32
    return %arg1, %c0_i32, %c0_i32_0 : i32, i32, i32
  }
  func.func @transform_14(%arg0: i32, %arg1: i32) -> i32 {
    %c0_i32 = arith.constant 0 : i32
    %c0_i32_0 = arith.constant 0 : i32
    return %c0_i32 : i32
  }
  func.func @transform_15(%arg0: i32, %arg1: i32) -> (i32, i32) {
    %c0_i32 = arith.constant 0 : i32
    %c0_i32_0 = arith.constant 0 : i32
    return %arg0, %c0_i32 : i32, i32
  }
}

</mosaic_0001>

<bundles_post_ra>
// kernel: tpu_custom_call.1
= control target key start
LH: loop header
LB: loop body
LE: loop exit
PB: predicated region body
PF: predicated region fallthrough
CT: control target
= control target key end

     0   :  { %s2695_s0 = inlined_call_operand.vmem [shape: f32[16,32], index: 0, kind: input, shape index: {}]   ;;  %s2696_s1 = inlined_call_operand.vmem [shape: f32[8,8], index: 1, kind: input, shape index: {}]   ;;  %s2697_s2 = inlined_call_operand.vmem [shape: bf16[2,4,32,8], index: 2, kind: input, shape index: {}]   ;;  %s2698_s3 = inlined_call_operand.vmem [shape: f32[2,4,1,8], index: 3, kind: input, shape index: {}]   ;;  %s2699_s4 = inlined_call_operand.vmem [shape: bf16[2,4,32,8], index: 4, kind: input, shape index: {}]   ;;  %s2700_s5 = inlined_call_operand.vmem [shape: f32[2,4,1,8], index: 5, kind: input, shape index: {}]   ;;  %s2701_s6 = inlined_call_operand.vmem [shape: bf16[2,4,32,8], index: 6, kind: input, shape index: {}]   ;;  %s2702_s7 = inlined_call_operand.vmem [shape: f32[2,4,1,8], index: 7, kind: input, shape index: {}]   ;;  %s2703_s8 = inlined_call_operand.vmem [shape: bf16[2,4,8,32], index: 8, kind: input, shape index: {}]   ;;  %s2704_s9 = inlined_call_operand.vmem [shape: f32[2,1,32], index: 9, kind: input, shape index: {}]   ;;  %s2705_s10 = inlined_call_operand.vmem [shape: bf16[2,32,64], index: 10, kind: input, shape index: {}]   ;;  %s2706_s11 = inlined_call_operand.vmem [shape: f32[2,1,64], index: 11, kind: input, shape index: {}]   ;;  %s2707_s12 = inlined_call_operand.vmem [shape: bf16[2,64,32], index: 12, kind: input, shape index: {}]   ;;  %s2708_s13 = inlined_call_operand.vmem [shape: f32[2,1,32], index: 13, kind: input, shape index: {}]   ;;  %s2709_s14 = inlined_call_operand.vmem [shape: f32[2], index: 14, kind: input, shape index: {}]   ;;  %s2710_s15 = inlined_call_operand.hbm [shape: f32[16,32], index: 15, kind: output, shape index: {}]  }
   0x1   :  { %2727 = sst [smem:[#allocation23_spill]] %s2695_s0 }
   0x2   :  { %2728 = sst [smem:[#allocation24_spill]] %s2696_s1 }
   0x3   :  { %2729 = sst [smem:[#allocation25_spill]] %s2697_s2 }
   0x4   :  { %2730 = sst [smem:[#allocation26_spill]] %s2698_s3 }
   0x5   :  { %2731 = sst [smem:[#allocation27_spill]] %s2699_s4 }
   0x6   :  { %2732 = sst [smem:[#allocation28_spill]] %s2700_s5 }
   0x7   :  { %2733 = sst [smem:[#allocation29_spill]] %s2701_s6 }
   0x8   :  { %2734 = sst [smem:[#allocation30_spill]] %s2702_s7 }
   0x9   :  { %2735 = sst [smem:[#allocation31_spill]] %s2703_s8 }
   0xa   :  { %2736 = sst [smem:[#allocation32_spill]] %s2709_s14 }
   0xb   :  { %2737 = sst [smem:[#allocation33_spill]] %s2710_s15 }
   0xc   :  { %20 = vsyncpa [#allocation5], 0 }
   0xd   :  { %21 = vsyncpa [#allocation4], 0 }
   0xe   :  { %23 = vsyncpa [#allocation4 + $0x1], 0  ;;  %s2380_s18 = smov 0   ;;  %s2382_s19 = smov 0  }
   0xf   :  { %s2384_s20 = smov 0   ;;  %s2386_s21 = smov 0  }
  0x10   :  { %s2388_s22 = smov 0   ;;  %s2390_s23 = smov 0  }
  0x11   :  { %s2392_s24 = smov 0   ;;  %s2394_s25 = smov 0  }
  0x12 LB: > { %2738 = sst [smem:[#allocation9_spill]] %s2269_s18  ;;  %s1811_s26 = sadd.s32 4294967295, %s2297_s25   ;;  %s2297_s25 = sphi %s2394_s25, %s29_s25   ;;  %s2293_s24 = sphi %s2392_s24, %s2780_s24   ;;  %s2289_s23 = sphi %s2390_s23, %s2779_s23   ;;  %s2285_s22 = sphi %s2388_s22, %s2778_s22   ;;  %s2281_s21 = sphi %s2386_s21, %s2777_s21   ;;  %s2277_s20 = sphi %s2384_s20, %s2776_s20   ;;  %s2273_s19 = sphi %s2382_s19, %s2775_s19   ;;  %s2269_s18 = sphi %s2380_s18, %s2774_s18  }
  0x13   : > { %2739 = sst [smem:[#allocation10_spill]] %s2273_s19  ;;  %s1812_s27 = sadd.s32 4294967294, %s2297_s25  }
  0x14   : > { %2740 = sst [smem:[#allocation11_spill]] %s2277_s20  ;;  %s38_s28 = sadd.s32 1, %s2289_s23 }
  0x15   : > { %2741 = sst [smem:[#allocation12_spill]] %s2285_s22  ;;  %s41_s29 = sadd.s32 1, %s2293_s24 }
  0x16   : > { %2742 = sst [smem:[#allocation13_spill]] %s2289_s23  ;;  %p39_p0 = scmp.ge.s32.totalorder %s38_s28, 2 }
  0x17   : > { %2743 = sst [smem:[#allocation14_spill]] %s2293_s24  ;;  %s428_s30 = sadd.s32 1, %s2277_s20 }
  0x18   : > { %2744 = sst [smem:[#allocation15_spill]] %s2297_s25  ;;  %p438_p1 = scmp.ne.s32.totalorder %s2277_s20, %s2273_s19 }
  0x19   : > { %p439_p2 = scmp.eq.s32.totalorder %s1811_s26, 3  ;;  %s2782_s28 = smov (%p39_p0, %s38_s28), 0 }
  0x1a   : > { %2745 = sst [smem:[#allocation16_spill]] %s2782_s28  ;;  %s2784_s29 = smov (!%p39_p0, %s41_s29), %s2293_s24 }
  0x1b   : > { %p2430_p3 = por %p439_p2, %p438_p1  ;;  %p444_p4 = scmp.ne.s32.totalorder %s2273_s19, %s2269_s18 }
  0x1c   : > { %p43_p5 = scmp.ge.s32.totalorder %s2784_s29, 2  ;;  %p445_p6 = scmp.eq.s32.totalorder %s1812_s27, 3 }
  0x1d   : > { %s2746_s16 = scalar_select %p2430_p3, 1, 0 }
  0x1e   : > { %p1813_p7 = scmp.ge.s32.totalorder %s2297_s25, 1  ;;  %p452_p8 = scmp.lt.s32.totalorder %s2297_s25, 5 }
  0x1f   : > { %2747 = sst [smem:[#allocation17_spill]] %s2746_s16  ;;  %s2786_s29 = smov (%p43_p5, %s2784_s29), 0 }
  0x20   : > { %2748 = sst [smem:[#allocation18_spill]] %s2786_s29  ;;  %p2440_p9 = por %p445_p6, %p444_p4 }
  0x21   : > { %p453_p10 = pnand %p1813_p7, %p452_p8  ;;  %s425_s28 = ssub.s32 %s2293_s24, %s2786_s29 }
  0x22   : > { %s2749_s17 = scalar_select %p2440_p9, 1, 0 }
  0x23   : > { %p426_p11 = scmp.eq.s32.totalorder %s425_s28, 0  ;;  %p2077_p12 = pneg %p453_p10 }
  0x24   : > { %2750 = sst [smem:[#allocation19_spill]] %s2749_s17  ;;  %p2085_p13 = scmp.eq.s32.totalorder %s1811_s26, 0 }
  0x25   : > { %s2751_s14 = sld [smem:[#allocation32_spill]]  ;;  %s2299_s27 = smov [#allocation3]  }
  0x26   : > { %s2450_s16 = scalar_select %p426_p11, %s2277_s20, %s428_s30  }
  0x27   : > { %p2078_p0 = pnand %p2085_p13, %p2077_p12 }
  0x28   : > { %2752 = sst [smem:[#allocation20_spill]] %s2450_s16  ;;  %574 = sbr.rel (%p453_p10) target bundleno = 1219 (0x4c3), region = 80 }
  0x2b   : > { %s467_s18 = sshll.u32 %s2751_s14, 4  ;;  %s468_s18 = int_to_ptr.vmem [resolvable:$true] %s467_s18 }
  0x2c   : > { %2080 = dma.vmem_to_smem (!%p2078_p0), %s468_s18, 16, %s2299_s27, [#allocation5]  }
  0x2d   : > { %2260 = dma.done.wait (%p2085_p13), [#allocation5], 16  }
  0x2e   : > { %2262 = vsyncadd (%p2085_p13), [#allocation5], 4294967280 }
  0x2f   : > { %581 = sfence }
  0x30   : > { %s2718_s26 = sand.u32 1, %s2273_s19   ;;  %p674_p1 = scmp.lt.s32.totalorder %s2285_s22, 1 }
  0x31   : > { %s2456_s15 = sshll.u32 %s2718_s26, 3  ;;  %p678_p2 = scmp.lt.s32.totalorder %s2281_s21, 1 }
  0x32   : > { %s675_s23 = scalar_select %p674_p1, %s2285_s22, 1 }
  0x33   : > { %s2461_s28 = scalar_select %p678_p2, %s2281_s21, 1 }
  0x34   : > { %s1819_s18 = sshll.u32 %s675_s23, 3  ;;  %s2753_s0 = sld [smem:[#allocation23_spill]] }
  0x35   : > { %s2035_s29 = sshll.u32 %s2461_s28, 6  ;;  %s2754_s2 = sld [smem:[#allocation25_spill]] }
  0x36   : > { %s1822_s20 = sshll.u32 %s2461_s28, 2  ;;  %s2756_s3 = sld [smem:[#allocation26_spill]] }
  0x37   : > { %s2758_s4 = sld [smem:[#allocation27_spill]]  ;;  %s2038_s17 = sshll.u32 %s2461_s28, 4 }
  0x38   : > { %s2759_s5 = sld [smem:[#allocation28_spill]]  ;;  %p1835_p4 = scmp.ne.s32.totalorder %s2281_s21, 0 }
  0x39   : > { %s2760_s6 = sld [smem:[#allocation29_spill]] }
  0x3a   : > { %s677_s14 = scalar_lea.vmem %s2753_s0, %s1819_s18  ;;  %s2761_s7 = sld [smem:[#allocation30_spill]] }
  0x3b   : > { %s2470_s16 = scalar_lea.vmem %s2754_s2, %s2035_s29  ;;  %s2762_s8 = sld [smem:[#allocation31_spill]] }
  0x3c   : > { %2755 = sst [smem:[#allocation21_spill]] %s2470_s16  ;;  %s2476_s19 = scalar_lea.vmem %s2756_s3, %s1822_s20 }
  0x3d   : > { %2757 = sst [smem:[#allocation22_spill]] %s2476_s19  ;;  %s2481_s1 = scalar_lea.vmem %s2758_s4, %s2035_s29 }
  0x3e   : > { %s2486_s27 = scalar_lea.vmem %s2759_s5, %s1822_s20  ;;  %s712_s18 = scalar_lea.vmem %s2704_s9, %s2461_s28 }
  0x3f   : > { %s2491_s0 = scalar_lea.vmem %s2760_s6, %s2035_s29  ;;  %s2511_s29 = scalar_lea.vmem %s2705_s10, %s2038_s17 }
  0x40   : > { %s2496_s25 = scalar_lea.vmem %s2761_s7, %s1822_s20  ;;  %s720_s2 = scalar_lea.vmem %s2706_s11, %s2461_s28 }
  0x41   : > { %s2502_s23 = scalar_lea.vmem %s2762_s8, %s2038_s17  ;;  %s2040_s20 = sshll.u32 %s2461_s28, 5 }
  0x42   : > { %s728_s3 = scalar_lea.vmem %s2708_s13, %s2461_s28  ;;  %s2525_s8 = scalar_lea.vmem %s2707_s12, %s2040_s20 }
  0x43   : > { %s673_s4 = scalar_lea.vmem [#allocation6], %s2456_s15  ;;  %733 = sbr.rel (%p1835_p4) target bundleno = 74 (0x4a), region = 88 }
  0x48   : > { %v734_v0 = vld [vmem:[%s677_s14] sm:$0xff]  ;;  %vm735_vm0 = vcmask 261120  }
  0x49   : > { %736 = vst.msk [vmem:[#allocation2] sm:$0xff] %vm735_vm0, %v734_v0 }
  0x4a PF: > { %s2763_s5 = sld [smem:[#allocation21_spill]]  ;;  %v2044_v2 = vld [vmem:[%s2481_s1 + $0x8] sm:$0xff]  ;;  %v2043_v6 = vld [vmem:[%s2481_s1] sm:$0xff]  ;;  %v2050_v10 = vld [vmem:[%s2481_s1 + $0x18] sm:$0xff]  ;;  %vm761_vm1 = vcmask 261120   ;;  %vm1171_vm2 = vcmask 64512  }
  0x4b   : > { %v2046_v3 = vld [vmem:[%s2491_s0 + $0x8] sm:$0xff]  ;;  %804 = vmatpush.bf16.msra.mxu1 %v2044_v2  ;;  %v2045_v8 = vld [vmem:[%s2491_s0] sm:$0xff]  ;;  %v2049_v14 = vld [vmem:[%s2481_s1 + $0x10] sm:$0xff]  ;;  %s2764_s6 = sld [smem:[#allocation22_spill]]  ;;  %vm1307_vm3 = vcmask 1043456   ;;  %vm1553_vm4 = vcmask 523264  }
  0x4c   : > { %837 = vmatpush.bf16.msra.mxu2 %v2046_v3  ;;  %v2056_v13 = vld [vmem:[%s2481_s1 + $0x28] sm:$0xff]  ;;  %v2052_v16 = vld [vmem:[%s2491_s0 + $0x18] sm:$0xff]  ;;  %v2055_v18 = vld [vmem:[%s2481_s1 + $0x20] sm:$0xff]  ;;  %s2765_s7 = sld [smem:[#allocation24_spill]]  ;;  %p2030_p5 = scmp.ne.s32.totalorder %s2281_s21, 1 }
  0x4d   : > { %v2062_v17 = vld [vmem:[%s2481_s1 + $0x38] sm:$0xff]  ;;  %v2051_v19 = vld [vmem:[%s2491_s0 + $0x10] sm:$0xff]  ;;  %v2058_v20 = vld [vmem:[%s2491_s0 + $0x28] sm:$0xff]  ;;  %s737_s14 = sld [smem:[#allocation3 + %s2281_s21]] }
  0x4e   : > { %v2061_v22 = vld [vmem:[%s2481_s1 + $0x30] sm:$0xff]  ;;  %v2057_v23 = vld [vmem:[%s2491_s0 + $0x20] sm:$0xff]  ;;  %v2064_v25 = vld [vmem:[%s2491_s0 + $0x38] sm:$0xff] }
  0x4f   : > { %805 = vmatpush.bf16.msra.mxu1 %v2043_v6  ;;  %v2063_v26 = vld [vmem:[%s2491_s0 + $0x30] sm:$0xff]  ;;  %v2154_v27 = vld [vmem:[%s2486_s27] ss:$0 sm:$0xff]  ;;  %v2157_v44 = vld [vmem:[%s2486_s27 + $0x1] ss:$0 sm:$0xff] }
  0x50   : > { %v2042_v1 = vld [vmem:[%s2763_s5 + $0x8] sm:$0xff]  ;;  %v2048_v4 = vld [vmem:[%s2763_s5 + $0x18] sm:$0xff]  ;;  %v2041_v5 = vld [vmem:[%s2763_s5] sm:$0xff]  ;;  %838 = vmatpush.bf16.msra.mxu2 %v2045_v8 }
  0x51   : > { %771 = vmatpush.bf16.msra.mxu0 %v2042_v1  ;;  %v2535_v7 = vld [vmem:[#allocation2] sm:$0xff]  ;;  %872 = vmatpush.bf16.msra.mxu3 %v2048_v4  ;;  %v2047_v9 = vld [vmem:[%s2763_s5 + $0x10] sm:$0xff]  ;;  %v2054_v11 = vld [vmem:[%s2763_s5 + $0x28] sm:$0xff] }
  0x52   : > { %v739_v12 = vpack.c.bf16 %v2535_v7, %v2535_v7  ;;  %v2053_v15 = vld [vmem:[%s2763_s5 + $0x20] sm:$0xff]  ;;  %v2060_v21 = vld [vmem:[%s2763_s5 + $0x38] sm:$0xff]  ;;  %v2059_v24 = vld [vmem:[%s2763_s5 + $0x30] sm:$0xff] }
  0x53   : > { %942 = vmatpush.bf16.msrb.mxu1 %v2052_v16  ;;  %v2153_v31 = vld [vmem:[%s2764_s6] ss:$0 sm:$0xff]  ;;  %v2160_v45 = vld [vmem:[%s2496_s25 + $0x1] ss:$0 sm:$0xff]  ;;  %v2159_v55 = vld [vmem:[%s2486_s27 + $0x2] ss:$0 sm:$0xff] }
  0x54   : > { %977 = vmatpush.bf16.msrb.mxu2 %v2054_v11  ;;  %1853 = vmatmul.msk.bf16.vlgmr.msra.gmra.mxu1 %vm761_vm1, %v739_v12  ;;  %v2155_v33 = vld [vmem:[%s2496_s25] ss:$0 sm:$0xff]  ;;  %v2156_v52 = vld [vmem:[%s2764_s6 + $0x1] ss:$0 sm:$0xff]  ;;  %v2158_v0 = vld [vmem:[%s2764_s6 + $0x2] ss:$0 sm:$0xff] }
  0x55   : > { %772 = vmatpush.bf16.msra.mxu0 %v2041_v5  ;;  %873 = vmatpush.bf16.msra.mxu3 %v2047_v9  ;;  %v2163_v4 = vld [vmem:[%s2496_s25 + $0x2] ss:$0 sm:$0xff] }
  0x56   : > { %1862 = vmatmul.msk.bf16.vlgmr.msra.gmra.mxu2 %vm761_vm1, %v739_v12 }
  0x57   : > { %943 = vmatpush.bf16.msrb.mxu1 %v2051_v19 }
  0x58   : > { %1844 = vmatmul.msk.bf16.vlgmr.msra.gmra.mxu0 %vm761_vm1, %v739_v12  ;;  %1876 = vmatmul.msk.bf16.vlgmr.msra.gmra.mxu3 %vm761_vm1, %v739_v12 }
  0x59   : > { %907 = vmatpush.bf16.msrb.mxu0 %v2050_v10  ;;  %1012 = vmatpush.bf16.msrb.mxu3 %v2056_v13 }
  0x5a   : > { %978 = vmatpush.bf16.msrb.mxu2 %v2053_v15 }
  0x5b   : > { %1082 = vmatpush.bf16.msra.mxu1 %v2060_v21 }
  0x5d   : > { %908 = vmatpush.bf16.msrb.mxu0 %v2049_v14  ;;  %1013 = vmatpush.bf16.msrb.mxu3 %v2055_v18  ;;  %v2161_v14 = vld [vmem:[%s2486_s27 + $0x3] ss:$0 sm:$0xff] }
  0x5e   : > { %1117 = vmatpush.bf16.msra.mxu2 %v2062_v17  ;;  %v2162_v18 = vld [vmem:[%s2764_s6 + $0x3] ss:$0 sm:$0xff] }
  0x5f   : > { %1083 = vmatpush.bf16.msra.mxu1 %v2059_v24 }
  0x61   : > { %1047 = vmatpush.bf16.msra.mxu0 %v2058_v20  ;;  %1152 = vmatpush.bf16.msra.mxu3 %v2064_v25 }
  0x62   : > { %1118 = vmatpush.bf16.msra.mxu2 %v2061_v22 }
  0x64   : > { %1904 = vmatmul.msk.bf16.vlgmr.msrb.gmra.mxu1 %vm761_vm1, %v739_v12 }
  0x65   : > { %1048 = vmatpush.bf16.msra.mxu0 %v2057_v23  ;;  %1153 = vmatpush.bf16.msra.mxu3 %v2063_v26 }
  0x66   : > { %1918 = vmatmul.msk.bf16.vlgmr.msrb.gmra.mxu2 %vm761_vm1, %v739_v12 }
  0x68   : > { %1890 = vmatmul.msk.bf16.vlgmr.msrb.gmra.mxu0 %vm761_vm1, %v739_v12  ;;  %1932 = vmatmul.msk.bf16.vlgmr.msrb.gmra.mxu3 %vm761_vm1, %v739_v12 }
  0x74   : > { %1960 = vmatmul.msk.bf16.vlgmr.msra.gmra.mxu1 %vm761_vm1, %v739_v12 }
  0x76   : > { %1974 = vmatmul.msk.bf16.vlgmr.msra.gmra.mxu2 %vm761_vm1, %v739_v12 }
  0x78   : > { %1946 = vmatmul.msk.bf16.vlgmr.msra.gmra.mxu0 %vm761_vm1, %v739_v12  ;;  %1988 = vmatmul.msk.bf16.vlgmr.msra.gmra.mxu3 %vm761_vm1, %v739_v12 }
  0xd1   : > { %v807_v29 = vpop.f32.mrf.mxu1 }
  0xd2   : > { %v808_v30 = vadd.f32 %v2154_v27, %v807_v29  ;;  %v2164_v27 = vld [vmem:[%s2496_s25 + $0x3] ss:$0 sm:$0xff] }
  0xd4   : > { %v1163_v32 = vpack.c.bf16 %v808_v30, %v808_v30 }
  0xd5   : > { %v774_v28 = vpop.f32.mrf.mxu0 }
  0xd6   : > { %v1176_v34 = vsel %vm1171_vm2, %v1163_v32, 0  ;;  %v775_v35 = vadd.f32 %v2153_v31, %v774_v28 }
  0xd7   : > { %1185 = vmatpush.bf16.xpose.msrb.mxu0 %v1176_v34 }
  0xd8   : > { %v1159_v41 = vpack.c.bf16 %v775_v35, %v775_v35 }
  0xd9   : > { %v840_v36 = vpop.f32.mrf.mxu2  ;;  %v809_v40 = vpop.f32.mrf.mxu1 }
  0xda   : > { %v841_v38 = vadd.f32 %v2155_v33, %v840_v36  ;;  %v740_v33 = vld [vmem:[%s2765_s7] sm:$0xff] }
  0xdb   : > { %v875_v37 = vpop.f32.mrf.mxu3 }
  0xdc   : > { %v1167_v42 = vpack.c.bf16 %v841_v38, %v841_v38  ;;  %v876_v58 = vadd.f32 %v2156_v52, %v875_v37 }
  0xdd   : > { %v776_v39 = vpop.f32.mrf.mxu0 }
  0xde   : > { %v1309_v43 = vsel %vm1307_vm3, %v1167_v42, 0  ;;  %1989 = vmatmul.msk.bf16.vlgmr.msrb.gmra.mxu0 %vm1171_vm2, %v1159_v41  ;;  %v1160_v2 = vpack.c.bf16 %v876_v58, %v876_v58 }
  0xdf   : > { %1318 = vmatpush.bf16.msra.mxu0 %v1309_v43 }
  0xe1   : > { %v842_v46 = vpop.f32.mrf.mxu2  ;;  %v945_v49 = vpop.f32.mrf.mxu1 }
  0xe2   : > { %v946_v51 = vadd.f32 %v2160_v45, %v945_v49 }
  0xe3   : > { %v877_v47 = vpop.f32.mrf.mxu3 }
  0xe4   : > { %v1168_v54 = vpack.c.bf16 %v946_v51, %v946_v51 }
  0xe5   : > { %v910_v48 = vpop.f32.mrf.mxu0 }
  0xe6   : > { %v911_v50 = vadd.f32 %v2157_v44, %v910_v48  ;;  %v1328_v57 = vsel %vm1307_vm3, %v1168_v54, 0 }
  0xe8   : > { %v1164_v53 = vpack.c.bf16 %v911_v50, %v911_v50 }
  0xe9   : > { %v980_v59 = vpop.f32.mrf.mxu2  ;;  %v947_v62 = vpop.f32.mrf.mxu1 }
  0xea   : > { %v1195_v56 = vsel %vm1171_vm2, %v1164_v53, 0  ;;  %v981_v5 = vadd.f32 %v2158_v0, %v980_v59 }
  0xeb   : > { %1204 = vmatpush.bf16.xpose.msrb.mxu1 %v1195_v56  ;;  %v1015_v60 = vpop.f32.mrf.mxu3 }
  0xec   : > { %v1016_v61 = vadd.f32 %v2159_v55, %v1015_v60  ;;  %v1161_v12 = vpack.c.bf16 %v981_v5, %v981_v5 }
  0xed   : > { %v912_v63 = vpop.f32.mrf.mxu0 }
  0xee   : > { %v1165_v1 = vpack.c.bf16 %v1016_v61, %v1016_v61 }
  0xf0   : > { %v1214_v3 = vsel %vm1171_vm2, %v1165_v1, 0 }
  0xf1   : > { %1223 = vmatpush.bf16.xpose.msrb.mxu2 %v1214_v3  ;;  %v982_v6 = vpop.f32.mrf.mxu2  ;;  %v1085_v9 = vpop.f32.mrf.mxu1 }
  0xf2   : > { %1990 = vmatmul.msk.bf16.vlgmr.msrb.gmra.mxu1 %vm1171_vm2, %v1160_v2  ;;  %v1086_v23 = vadd.f32 %v2162_v18, %v1085_v9 }
  0xf3   : > { %1337 = vmatpush.bf16.msra.mxu1 %v1328_v57  ;;  %v1017_v8 = vpop.f32.mrf.mxu3 }
  0xf4   : > { %v1162_v25 = vpack.c.bf16 %v1086_v23, %v1086_v23 }
  0xf5   : > { %v1050_v10 = vpop.f32.mrf.mxu0 }
  0xf6   : > { %v1051_v11 = vadd.f32 %v2163_v4, %v1050_v10 }
  0xf8   : > { %v1169_v13 = vpack.c.bf16 %v1051_v11, %v1051_v11  ;;  %1991 = vmatmul.msk.bf16.vlgmr.msrb.gmra.mxu2 %vm1171_vm2, %v1161_v12 }
  0xf9   : > { %v1120_v16 = vpop.f32.mrf.mxu2  ;;  %v1087_v19 = vpop.f32.mrf.mxu1 }
  0xfa   : > { %v1347_v15 = vsel %vm1307_vm3, %v1169_v13, 0  ;;  %v1121_v17 = vadd.f32 %v2161_v14, %v1120_v16 }
  0xfb   : > { %1356 = vmatpush.bf16.msra.mxu2 %v1347_v15  ;;  %v1155_v26 = vpop.f32.mrf.mxu3 }
  0xfc   : > { %v1166_v21 = vpack.c.bf16 %v1121_v17, %v1121_v17  ;;  %v1156_v28 = vadd.f32 %v2164_v27, %v1155_v26  ;;  %v1382_v26 = vld [vmem:[%s2502_s23] sm:$0xf] }
  0xfd   : > { %v1052_v20 = vpop.f32.mrf.mxu0  ;;  %v1409_v27 = vsel %vm1307_vm3, %v1382_v26, 0 }
  0xfe   : > { %v1233_v22 = vsel %vm1171_vm2, %v1166_v21, 0  ;;  %v1170_v29 = vpack.c.bf16 %v1156_v28, %v1156_v28  ;;  %1418 = vmatpush.bf16.msrb.mxu1 %v1409_v27  ;;  %v1997_v28 = vld [vmem:[%s2502_s23 + $0x4] sm:$0xf] }
  0xff   : > { %1242 = vmatpush.bf16.xpose.msrb.mxu3 %v1233_v22 }
 0x100   : > { %v1366_v31 = vsel %vm1307_vm3, %v1170_v29, 0  ;;  %v1390_v29 = vsel %vm1307_vm3, %v1997_v28, 0 }
 0x101   : > { %v1122_v24 = vpop.f32.mrf.mxu2  ;;  %1399 = vmatpush.bf16.msrb.mxu0 %v1390_v29 }
 0x103   : > { %v1157_v30 = vpop.f32.mrf.mxu3 }
 0x106   : > { %1992 = vmatmul.msk.bf16.vlgmr.msrb.gmra.mxu3 %vm1171_vm2, %v1162_v25 }
 0x107   : > { %1375 = vmatpush.bf16.msra.mxu3 %v1366_v31  ;;  %v2000_v31 = vld [vmem:[%s2502_s23 + $0x8] sm:$0xf] }
 0x15b   : > { %v1187_v32 = vpop.f32.mrf.mxu0 }
 0x15c   : > { %v1248_v34 = vmul.f32 0.35355338, %v1187_v32 }
 0x15e   : > { %v1252_v35 = vadd.f32 %v1248_v34, %v740_v33 }
 0x160   : > { %v1256_v36 = vsel %vm1171_vm2, %v1252_v35, -inf }
 0x161   : > { %1257 = vmax.xlane.f32.xlu1 %v1256_v36 }
 0x163   : > { %v1189_v37 = vpop.f32.mrf.mxu0 }
 0x16f   : > { %v1206_v38 = vpop.f32.mrf.mxu1 }
 0x170   : > { %v1249_v39 = vmul.f32 0.35355338, %v1206_v38 }
 0x172   : > { %v1253_v40 = vadd.f32 %v1249_v39, %v740_v33 }
 0x174   : > { %v1259_v41 = vsel %vm1171_vm2, %v1253_v40, -inf }
 0x175   : > { %1260 = vmax.xlane.f32.xlu1 %v1259_v41 }
 0x177   : > { %v1208_v42 = vpop.f32.mrf.mxu1 }
 0x17b   : > { %v1225_v43 = vpop.f32.mrf.mxu2 }
 0x17c   : > { %v1250_v44 = vmul.f32 0.35355338, %v1225_v43 }
 0x17e   : > { %v1254_v45 = vadd.f32 %v1250_v44, %v740_v33 }
 0x180   : > { %v1262_v46 = vsel %vm1171_vm2, %v1254_v45, -inf }
 0x181   : > { %1263 = vmax.xlane.f32.xlu0 %v1262_v46 }
 0x183   : > { %v1227_v47 = vpop.f32.mrf.mxu2 }
 0x189   : > { %v1244_v48 = vpop.f32.mrf.mxu3 }
 0x18a   : > { %v1251_v49 = vmul.f32 0.35355338, %v1244_v48 }
 0x18c   : > { %v1255_v50 = vadd.f32 %v1251_v49, %v740_v33  ;;  %v1431_v33 = vsel %vm1307_vm3, %v2000_v31, 0 }
 0x18d   : > { %1440 = vmatpush.bf16.msrb.mxu2 %v1431_v33 }
 0x18e   : > { %v1265_v51 = vsel %vm1171_vm2, %v1255_v50, -inf }
 0x18f   : > { %1266 = vmax.xlane.f32.xlu0 %v1265_v51  ;;  %v2065_v51 = vld [vmem:[%s2511_s29] sm:$0xff] }
 0x191   : > { %v1246_v52 = vpop.f32.mrf.mxu3 }
 0x192   : > { %v2070_v52 = vld [vmem:[%s2525_s8 + $0x18] sm:$0xff] }
 0x1d4   : > { %v1258_v53 = vpop.xlane.xlu1 %1257 }
 0x1d5   : > { %v1268_v54 = vsub.f32 %v1252_v35, %v1258_v53  ;;  %v2002_v35 = vld [vmem:[%s2502_s23 + $0xc] sm:$0xf]  ;;  %v2069_v53 = vld [vmem:[%s2525_s8 + $0x10] sm:$0xff] }
 0x1d6   : > { %v1454_v36 = vsel %vm1307_vm3, %v2002_v35, 0 }
 0x1d7   : > { %v1272_v55 = vmul.f32 1.442695, %v1268_v54  ;;  %1463 = vmatpush.bf16.msrb.mxu3 %v1454_v36 }
 0x1d9   : > { %2168 = vpow2.f32 %v1272_v55 }
 0x1df   : > { %v2169_v56 = vpop.eup %2168 }
 0x1e0   : > { %v1280_v57 = vsel %vm1171_vm2, %v2169_v56, 0.0 }
 0x1e1   : > { %1281 = vadd.xlane.f32.xlu0 %v1280_v57 }
 0x1e8   : > { %v1261_v58 = vpop.xlane.xlu1 %1260 }
 0x1e9   : > { %v1269_v59 = vsub.f32 %v1253_v40, %v1261_v58  ;;  %v2165_v58 = vld [vmem:[%s712_s18] ss:$0 sm:$0xff] }
 0x1eb   : > { %v1274_v60 = vmul.f32 1.442695, %v1269_v59 }
 0x1ed   : > { %2170 = vpow2.f32 %v1274_v60 }
 0x1f3   : > { %v2171_v61 = vpop.eup %2170 }
 0x1f4   : > { %v1283_v62 = vsel %vm1171_vm2, %v2171_v61, 0.0  ;;  %v1264_v63 = vpop.xlane.xlu0 %1263 }
 0x1f5   : > { %1284 = vadd.xlane.f32.xlu1 %v1283_v62  ;;  %v1270_v0 = vsub.f32 %v1254_v45, %v1264_v63 }
 0x1f7   : > { %v1276_v1 = vmul.f32 1.442695, %v1270_v0 }
 0x1f9   : > { %2172 = vpow2.f32 %v1276_v1 }
 0x1ff   : > { %v2173_v2 = vpop.eup %2172 }
 0x200   : > { %v1286_v3 = vsel %vm1171_vm2, %v2173_v2, 0.0 }
 0x201   : > { %1287 = vadd.xlane.f32.xlu2 %v1286_v3  ;;  %v2068_v3 = vld [vmem:[%s2525_s8 + $0x8] sm:$0xff] }
 0x202   : > { %v1267_v4 = vpop.xlane.xlu0 %1266 }
 0x203   : > { %v1271_v5 = vsub.f32 %v1255_v50, %v1267_v4  ;;  %v2066_v50 = vld [vmem:[%s2511_s29 + $0x8] sm:$0xff]  ;;  %v2067_v4 = vld [vmem:[%s2525_s8] sm:$0xff] }
 0x205   : > { %v1278_v6 = vmul.f32 1.442695, %v1271_v5  ;;  %v2166_v5 = vld [vmem:[%s720_s2] ss:$0 sm:$0xff] }
 0x207   : > { %2174 = vpow2.f32 %v1278_v6 }
 0x20d   : > { %v2175_v8 = vpop.eup %2174 }
 0x20e   : > { %v1289_v9 = vsel %vm1171_vm2, %v2175_v8, 0.0 }
 0x20f   : > { %1290 = vadd.xlane.f32.xlu2 %v1289_v9 }
 0x254   : > { %v1282_v10 = vpop.xlane.xlu0 %1281 }
 0x255   : > { %2176 = vrcp.f32 %v1282_v10 }
 0x25b   : > { %v2177_v11 = vpop.eup %2176 }
 0x25c   : > { %v1296_v12 = vmul.f32 %v2177_v11, %v2169_v56  ;;  %v2167_v11 = vld [vmem:[%s728_s3] ss:$0 sm:$0xff] }
 0x25e   : > { %v1300_v13 = vpack.c.bf16 %v1296_v12, %v1296_v12 }
 0x260   : > { %1993 = vmatmul.msk.bf16.vlgmr.msra.gmra.mxu0 %vm1171_vm2, %v1300_v13 }
 0x261   : > { %1508 = vmatpush.bf16.msra.mxu0 %v2066_v50 }
 0x265   : > { %1509 = vmatpush.bf16.msra.mxu0 %v2065_v51 }
 0x268   : > { %v1285_v14 = vpop.xlane.xlu1 %1284 }
 0x269   : > { %2178 = vrcp.f32 %v1285_v14 }
 0x26f   : > { %v2179_v15 = vpop.eup %2178 }
 0x270   : > { %v1297_v16 = vmul.f32 %v2179_v15, %v2171_v61  ;;  %v1475_v61 = vstv %s737_s14 }
 0x272   : > { %v1301_v17 = vpack.c.bf16 %v1297_v16, %v1297_v16 }
 0x274   : > { %1994 = vmatmul.msk.bf16.vlgmr.msra.gmra.mxu1 %vm1171_vm2, %v1301_v17  ;;  %v1288_v18 = vpop.xlane.xlu2 %1287 }
 0x275   : > { %2180 = vrcp.f32 %v1288_v18  ;;  %1561 = vmatpush.bf16.msra.mxu1 %v2070_v52 }
 0x279   : > { %1562 = vmatpush.bf16.msra.mxu1 %v2069_v53 }
 0x27b   : > { %v2181_v19 = vpop.eup %2180 }
 0x27c   : > { %v1298_v20 = vmul.f32 %v2181_v19, %v2173_v2 }
 0x27d   : > { %1563 = vmatpush.bf16.msra.mxu1 %v2068_v3 }
 0x27e   : > { %v1302_v21 = vpack.c.bf16 %v1298_v20, %v1298_v20 }
 0x280   : > { %1995 = vmatmul.msk.bf16.vlgmr.msra.gmra.mxu2 %vm1171_vm2, %v1302_v21 }
 0x281   : > { %1564 = vmatpush.bf16.msra.mxu1 %v2067_v4 }
 0x282   : > { %v1291_v22 = vpop.xlane.xlu2 %1290 }
 0x283   : > { %2182 = vrcp.f32 %v1291_v22 }
 0x289   : > { %v2183_v23 = vpop.eup %2182 }
 0x28a   : > { %v1299_v24 = vmul.f32 %v2183_v23, %v2175_v8 }
 0x28c   : > { %v1303_v25 = vpack.c.bf16 %v1299_v24, %v1299_v24 }
 0x28e   : > { %1996 = vmatmul.msk.bf16.vlgmr.msra.gmra.mxu3 %vm1171_vm2, %v1303_v25 }
 0x2dd   : > { %v1320_v30 = vpop.f32.mrf.mxu0 }
 0x2de   : > { %v1381_v32 = vpack.c.bf16 %v1320_v30, %v1320_v30 }
 0x2e0   : > { %1999 = vmatmul.msk.bf16.vlgmr.msrb.gmra.mxu1 %vm1171_vm2, %v1381_v32 }
 0x2e5   : > { %v1322_v34 = vpop.f32.mrf.mxu0 }
 0x2f1   : > { %v1339_v37 = vpop.f32.mrf.mxu1 }
 0x2f2   : > { %v1383_v38 = vpack.c.bf16 %v1339_v37, %v1339_v37 }
 0x2f4   : > { %1998 = vmatmul.msk.bf16.vlgmr.msrb.gmra.mxu0 %vm1171_vm2, %v1383_v38 }
 0x2f9   : > { %v1341_v39 = vpop.f32.mrf.mxu1 }
 0x303   : > { %v1358_v40 = vpop.f32.mrf.mxu2 }
 0x304   : > { %v1424_v41 = vpack.c.bf16 %v1358_v40, %v1358_v40 }
 0x306   : > { %2001 = vmatmul.msk.bf16.vlgmr.msrb.gmra.mxu2 %vm1171_vm2, %v1424_v41 }
 0x30b   : > { %v1360_v42 = vpop.f32.mrf.mxu2 }
 0x311   : > { %v1377_v43 = vpop.f32.mrf.mxu3 }
 0x312   : > { %v1447_v44 = vpack.c.bf16 %v1377_v43, %v1377_v43 }
 0x314   : > { %2003 = vmatmul.msk.bf16.vlgmr.msrb.gmra.mxu3 %vm1171_vm2, %v1447_v44 }
 0x319   : > { %v1379_v45 = vpop.f32.mrf.mxu3 }
 0x35d   : > { %v1420_v46 = vpop.f32.mrf.mxu1 }
 0x365   : > { %v1422_v47 = vpop.f32.mrf.mxu1 }
 0x371   : > { %v1401_v48 = vpop.f32.mrf.mxu0 }
 0x372   : > { %v1421_v56 = vadd.f32 %v1420_v46, %v1401_v48 }
 0x379   : > { %v1403_v49 = vpop.f32.mrf.mxu0 }
 0x389   : > { %v1442_v54 = vpop.f32.mrf.mxu2 }
 0x38a   : > { %v1446_v57 = vadd.f32 %v1442_v54, %v1421_v56 }
 0x391   : > { %v1444_v55 = vpop.f32.mrf.mxu2 }
 0x397   : > { %v1465_v59 = vpop.f32.mrf.mxu3 }
 0x398   : > { %v1469_v60 = vadd.f32 %v1465_v59, %v1446_v57 }
 0x39a   : > { %v1474_v62 = vadd.f32 %v2165_v58, %v1469_v60 }
 0x39c   : > { %v1476_v63 = vmul.f32 %v1475_v61, %v1474_v62 }
 0x39e   : > { %v1477_v0 = vadd.f32 %v1476_v63, %v2535_v7 }
 0x39f   : > { %v1467_v1 = vpop.f32.mrf.mxu3 }
 0x3a0   : > { %v1478_v2 = vpack.c.bf16 %v1477_v0, %v1477_v0 }
 0x3a2   : > { %2012 = vmatmul.msk.bf16.vlgmr.msra.gmra.mxu0 %vm761_vm1, %v1478_v2 }
 0x41f   : > { %v1511_v6 = vpop.f32.mrf.mxu0 }
 0x420   : > { %v1512_v8 = vadd.f32 %v2166_v5, %v1511_v6 }
 0x422   : > { %v1515_v9 = vmax.f32 %v1512_v8, 0.0 }
 0x424   : > { %v1516_v10 = vpack.c.bf16 %v1515_v9, %v1515_v9 }
 0x426   : > { %2029 = vmatmul.msk.bf16.vlgmr.msra.gmra.mxu1 %vm1553_vm4, %v1516_v10 }
 0x427   : > { %v1513_v7 = vpop.f32.mrf.mxu0 }
 0x4a3   : > { %v1566_v12 = vpop.f32.mrf.mxu1 }
 0x4a4   : > { %v1567_v13 = vadd.f32 %v2167_v11, %v1566_v12 }
 0x4a6   : > { %v1570_v14 = vmul.f32 %v1567_v13, %v1475_v61 }
 0x4a7   : > { %1576 = sbr.rel (%p2030_p5) target bundleno = 1197 (0x4ad), region = 92 }
 0x4a8   : > { %v1571_v15 = vadd.f32 %v1570_v14, %v1477_v0 }
 0x4aa   : > { %1572 = vst.msk [vmem:[#allocation2] sm:$0xff] %vm761_vm1, %v1571_v15 }
 0x4ab   : > { %v1568_v16 = vpop.f32.mrf.mxu1 }
 0x4ac   : > { %1577 = vst.msk [vmem:[%s673_s4] sm:$0xff] %vm761_vm1, %v1571_v15 }
 0x4ad PF: > { %s2766_s8 = sld [smem:[#allocation12_spill]]  ;;  %s1591_s16 = sshll.u32 %s673_s4, 4  ;;  %s1592_s16 = int_to_ptr.vmem [resolvable:$true] %s1591_s16 }
 0x4ae   : > { %s2767_s18 = sld [smem:[#allocation10_spill]] }
 0x4af   : > { %s2769_s2 = sld [smem:[#allocation33_spill]] }
 0x4b3   : > { %s2032_s29 = sshll.u32 %s2766_s8, 3 }
 0x4b4   : > { %s2770_s21 = sand.u32 1, %s2767_s18  }
 0x4b5   : > { %s1589_s20 = scalar_lea.hbm %s2769_s2, %s2032_s29  ;;  %s1579_s22 = scalar_lea.sflag [#allocation4], %s2770_s21 }
 0x4b6   : > { %s1593_s3 = sshll.u32 %s1589_s20, 4  ;;  %s2219_s7 = scalar_lea.hbm %s2769_s2, 16  ;;  %s1594_s3 = int_to_ptr.hbm [resolvable:$true] %s1593_s3 }
 0x4b7   : > { %s2213_s5 = sshra.s32 %s1594_s3, 4  ;;  %s2214_s5 = int_to_ptr.hbm [resolvable:$true] %s2213_s5 }
 0x4b8   : > { %s2215_s6 = scalar_lea.hbm %s2214_s5, 8  ;;  %p2220_p10 = scmp.lt.s32.totalorder %s2214_s5, %s2769_s2 }
 0x4b9   : > { %p2216_p6 = scmp.ne.s32.totalorder %s2214_s5, %s2215_s6  ;;  %p2221_p11 = scmp.lt.s32.totalorder %s2219_s7, %s2215_s6 }
 0x4bb   : > { %p2217_p7 = pnand %p2216_p6, %p2430_p3  ;;  %p2222_p12 = por %p2221_p11, %p2220_p10 }
 0x4bd   : > { %p2218_p8 = pneg %p2217_p7 }
 0x4bf   : > { %p2223_p13 = pnand %p2222_p12, %p2218_p8 }
 0x4c1   : > { %2226 = shalt.err (!%p2223_p13)
}
 0x4c2   : > { %2075 = dma.vmem_to_hbm [thread:$0]  (%p2430_p3), %s1592_s16, 128, %s1594_s3, %s1579_s22  }
 0x4c3 PF: > { %s2771_s15 = sld [smem:[#allocation15_spill]] }
 0x4c4   : > { %s2772_s4 = sld [smem:[#allocation9_spill]] }
 0x4c9   : > { %p2087_p0 = scmp.ge.s32.totalorder %s2771_s15, 2 }
 0x4ca   : > { %s1605_s25 = sand.u32 1, %s2772_s4  }
 0x4cb   : > { %p2082_p1 = pnand %p2087_p0, %p2440_p9  ;;  %s1606_s17 = scalar_lea.sflag [#allocation4], %s1605_s25 }
 0x4cd   : > { %p2083_p2 = pneg %p2082_p1 }
 0x4cf   : > { %2264 = dma.done.wait (%p2083_p2), %s1606_s17, 128  }
 0x4d0   : > { %2266 = vsyncadd (%p2083_p2), %s1606_s17, 4294967168  ;;  %s29_s25 = sadd.s32 1, %s2771_s15   ;;  %s2774_s18 = sld [smem:[#allocation10_spill]] }
 0x4d1   : > { %p26_p4 = scmp.ge.s32.totalorder %s29_s25, 6   ;;  %s2775_s19 = sld [smem:[#allocation11_spill]] }
 0x4d2   : > { %s2776_s20 = sld [smem:[#allocation20_spill]] }
 0x4d3   : > { %s2777_s21 = sld [smem:[#allocation13_spill]]  ;;  %28 = sbr.rel (!%p26_p4) target bundleno = 18 (0x12), region = 185 }
 0x4d4   : > { %s2778_s22 = sld [smem:[#allocation14_spill]] }
 0x4d5   : > { %s2779_s23 = sld [smem:[#allocation16_spill]] }
 0x4d6   : > { %s2780_s24 = sld [smem:[#allocation18_spill]] }
 0x4d8   :  { %1612 = vsyncpa [#allocation4], 1 }
 0x4d9   :  { %1614 = vsyncpa [#allocation4 + $0x1], 1 }
 0x4da   :  { %1615 = vsyncpa [#allocation5], 1 }
 0x4db   :  { %1617 = vsyncpa [#allocation5 + $0x1], 1 }

</bundles_post_ra>
